<compile_context>
chip_gen: v7x
topology: tpu7x:2x2x1
jax: 0.10.0
libtpu: 0.0.40
codegen_flags: <defaults>
</compile_context>

<pallas_src>
import functools

import jax
import jax.numpy as jnp
from jax.experimental import pallas as pl
from jax.experimental.pallas import tpu as pltpu


def _mlp_kernel(x_ref, w_in_ref, b_in_ref, w_mid_ref, b_mid_ref,
                w_out_ref, b_out_ref, o_ref, *, num_middle):
    # layer_in: input feature dim is 1, so W_in @ x is an outer product done
    # on the VPU via broadcasting: (Hp, 1) * (1, tile_n) + (Hp, 1).
    h = jnp.tanh(w_in_ref[...] * x_ref[...] + b_in_ref[...])      # (Hp, tile_n)

    # middle layers: static unroll (num_middle is a compile-time constant).
    # Weights are stored (out, in), so the transposed-layout update is W @ h.
    for i in range(num_middle):
        w = w_mid_ref[i]                      # (Hp, Hp)
        b = b_mid_ref[i]                      # (Hp, 1), already 2-D
        h = jnp.tanh(jnp.dot(w, h, preferred_element_type=jnp.float32) + b)

    # layer_out: (1, Hp) @ (Hp, tile_n) -> lane-dense (1, tile_n) MXU result.
    out = jnp.dot(w_out_ref[...], h, preferred_element_type=jnp.float32)
    o_ref[...] = (out + b_out_ref[...]).astype(o_ref.dtype)


def _full_spec(arr):
    nd = arr.ndim
    return pl.BlockSpec(arr.shape, lambda i, _nd=nd: (0,) * _nd)


def nn_approximator_pallas(x, packed, *, tile_n=512):
    """x: (N, 1) float32. packed: dict from pack_params (lane-padded weights)."""
    N = x.shape[0]
    num_middle = packed["w_mid"].shape[0]

    # Large lane-dense tiles; keep >=2 grid steps when possible so the two
    # v7x TensorCores both get steps along the "parallel" batch axis.
    tile_n = min(tile_n, N)
    if N // tile_n < 2 and N % 256 == 0:
        tile_n = N // 2
    assert N % tile_n == 0
    assert tile_n % 128 == 0 or tile_n == N

    x_t = x.reshape(1, N)   # batch onto the lane axis (layout plumbing only)

    kernel = functools.partial(_mlp_kernel, num_middle=num_middle)
    grid = (N // tile_n,)

    out = pl.pallas_call(
        kernel,
        out_shape=jax.ShapeDtypeStruct((1, N), x.dtype),
        grid_spec=pltpu.PrefetchScalarGridSpec(
            num_scalar_prefetch=0,
            grid=grid,
            in_specs=[
                pl.BlockSpec((1, tile_n), lambda i: (0, i)),   # x (lane-dense)
                _full_spec(packed["w_in"]),                    # (Hp, 1)
                _full_spec(packed["b_in"]),                    # (Hp, 1)
                _full_spec(packed["w_mid"]),                   # (M, Hp, Hp)
                _full_spec(packed["b_mid"]),                   # (M, Hp, 1)
                _full_spec(packed["w_out"]),                   # (1, Hp)
                _full_spec(packed["b_out"]),                   # (1, 1)
            ],
            out_specs=pl.BlockSpec((1, tile_n), lambda i: (0, i)),
        ),
        compiler_params=pltpu.CompilerParams(
            dimension_semantics=("parallel",),
            vmem_limit_bytes=32 * 1024 * 1024),
    )(x_t, packed["w_in"], packed["b_in"], packed["w_mid"],
      packed["b_mid"], packed["w_out"], packed["b_out"])

    return out.reshape(N, 1)


def init_params(key, num_hidden, dim_hidden):
    """PyTorch-layout params: Linear weight (out, in), bias (out,);
    init mirrors nn.Linear's U(-1/sqrt(fan_in), 1/sqrt(fan_in))."""
    num_middle = num_hidden - 1
    keys = jax.random.split(key, 6)

    def uniform(k, shape, fan_in):
        bound = 1.0 / jnp.sqrt(jnp.float32(fan_in))
        return jax.random.uniform(k, shape, jnp.float32, -bound, bound)

    H = dim_hidden
    return {
        "w_in": uniform(keys[0], (H, 1), 1),
        "b_in": uniform(keys[1], (H,), 1),
        "w_mid": uniform(keys[2], (num_middle, H, H), H),
        "b_mid": uniform(keys[3], (num_middle, H), H),
        "w_out": uniform(keys[4], (1, H), H),
        "b_out": uniform(keys[5], (1,), H),
    }


def pack_params(params, lane=128):
    """Zero-pad the hidden dim to a multiple of 128 and reshape biases to 2-D
    column tiles.  Done once in the wrapper, outside the kernel.
    """
    # TODO(synk): block-diagonal 4x packing of the 32x32 weights would give ~4x
    # effective MXU utilization; zero-padding keeps (8,128) alignment with no
    # in-kernel relayout and is numerically exact.
    H = params["b_in"].shape[0]
    Hp = ((H + lane - 1) // lane) * lane
    p = Hp - H
    M = params["w_mid"].shape[0]
    return {
        "w_in": jnp.pad(params["w_in"], ((0, p), (0, 0))),                   # (Hp, 1)
        "b_in": jnp.pad(params["b_in"], ((0, p),)).reshape(Hp, 1),           # (Hp, 1)
        "w_mid": jnp.pad(params["w_mid"], ((0, 0), (0, p), (0, p))),         # (M, Hp, Hp)
        "b_mid": jnp.pad(params["b_mid"], ((0, 0), (0, p))).reshape(M, Hp, 1),
        "w_out": jnp.pad(params["w_out"], ((0, 0), (0, p))),                 # (1, Hp)
        "b_out": params["b_out"].reshape(1, 1),                              # (1, 1)
    }


def nn_approximator_ref(x, params):
    """Pure-JAX reference matching the PyTorch forward (PyTorch weight layout)."""
    h = jnp.tanh(x @ params["w_in"].T + params["b_in"])
    for i in range(params["w_mid"].shape[0]):
        h = jnp.tanh(h @ params["w_mid"][i].T + params["b_mid"][i])
    return h @ params["w_out"].T + params["b_out"]


if __name__ == "__main__":
    key = jax.random.PRNGKey(0)
    k_param, k_x = jax.random.split(key)

    num_hidden = 3     # -> 2 middle layers
    dim_hidden = 32
    N = 1024           # collocation points; 2 lane-dense tiles of 512

    params = init_params(k_param, num_hidden, dim_hidden)
    packed = pack_params(params)
    x = jax.random.uniform(k_x, (N, 1), jnp.float32, -1.0, 1.0)

    out = nn_approximator_pallas(x, packed, tile_n=512)
    out = jax.block_until_ready(out)

    ref = nn_approximator_ref(x, params)
    assert out.shape == (N, 1)
    assert jnp.allclose(out, ref, atol=1e-4, rtol=1e-4), float(
        jnp.max(jnp.abs(out - ref)))

    print("KERNEL_OK")
</pallas_src>

<mosaic_0001>
module attributes {stable_mosaic.version = 11 : i64} {
  func.func @_mlp_kernel(%arg0: i32, %arg1: memref<1x512xf32, #tpu.memory_space<vmem>>, %arg2: memref<128x1xf32, #tpu.memory_space<vmem>>, %arg3: memref<128x1xf32, #tpu.memory_space<vmem>>, %arg4: memref<2x128x128xf32, #tpu.memory_space<vmem>>, %arg5: memref<2x128x1xf32, #tpu.memory_space<vmem>>, %arg6: memref<1x128xf32, #tpu.memory_space<vmem>>, %arg7: memref<1x1xf32, #tpu.memory_space<vmem>>, %arg8: memref<1x512xf32, #tpu.memory_space<vmem>>) attributes {dimension_semantics = [#tpu.dimension_semantics<parallel>], iteration_bounds = array<i64: 2>, scalar_prefetch = 0 : i64, scratch_operands = 0 : i64, tpu.core_type = #tpu.core_type<tc>, window_params = [{transform_indices = @transform_0, window_bounds = array<i64: 1, 512>}, {pipeline_mode = #tpu.pipeline_mode<synchronous>, transform_indices = @transform_1, window_bounds = array<i64: 128, 1>}, {pipeline_mode = #tpu.pipeline_mode<synchronous>, transform_indices = @transform_2, window_bounds = array<i64: 128, 1>}, {pipeline_mode = #tpu.pipeline_mode<synchronous>, transform_indices = @transform_3, window_bounds = array<i64: 2, 128, 128>}, {pipeline_mode = #tpu.pipeline_mode<synchronous>, transform_indices = @transform_4, window_bounds = array<i64: 2, 128, 1>}, {pipeline_mode = #tpu.pipeline_mode<synchronous>, transform_indices = @transform_5, window_bounds = array<i64: 1, 128>}, {pipeline_mode = #tpu.pipeline_mode<synchronous>, transform_indices = @transform_6, window_bounds = array<i64: 1, 1>}, {transform_indices = @transform_7, window_bounds = array<i64: 1, 512>}]} {
    %c0 = arith.constant 0 : index
    %c0_0 = arith.constant 0 : index
    %0 = vector.load %arg2[%c0, %c0_0] : memref<128x1xf32, #tpu.memory_space<vmem>>, vector<128x1xf32>
    %c0_1 = arith.constant 0 : index
    %c0_2 = arith.constant 0 : index
    %1 = vector.load %arg1[%c0_1, %c0_2] : memref<1x512xf32, #tpu.memory_space<vmem>>, vector<1x512xf32>
    %2 = vector.broadcast %0 : vector<128x1xf32> to vector<128x512xf32>
    %3 = vector.broadcast %1 : vector<1x512xf32> to vector<128x512xf32>
    %4 = arith.mulf %2, %3 : vector<128x512xf32>
    %c0_3 = arith.constant 0 : index
    %c0_4 = arith.constant 0 : index
    %5 = vector.load %arg3[%c0_3, %c0_4] : memref<128x1xf32, #tpu.memory_space<vmem>>, vector<128x1xf32>
    %6 = vector.broadcast %5 : vector<128x1xf32> to vector<128x512xf32>
    %7 = arith.addf %4, %6 : vector<128x512xf32>
    %8 = math.tanh %7 : vector<128x512xf32>
    %c0_5 = arith.constant 0 : index
    %c0_6 = arith.constant 0 : index
    %c0_7 = arith.constant 0 : index
    %9 = vector.load %arg4[%c0_5, %c0_6, %c0_7] : memref<2x128x128xf32, #tpu.memory_space<vmem>>, vector<1x128x128xf32>
    %10 = vector.shape_cast %9 : vector<1x128x128xf32> to vector<128x128xf32>
    %c0_8 = arith.constant 0 : index
    %c0_9 = arith.constant 0 : index
    %c0_10 = arith.constant 0 : index
    %11 = vector.load %arg5[%c0_8, %c0_9, %c0_10] : memref<2x128x1xf32, #tpu.memory_space<vmem>>, vector<1x128x1xf32>
    %12 = vector.shape_cast %11 : vector<1x128x1xf32> to vector<128x1xf32>
    %cst = arith.constant dense<0.000000e+00> : vector<128x512xf32>
    %13 = tpu.matmul %10, %8, %cst {dimension_numbers = #tpu.dot_dimension_numbers<[1], [0], [0], [1], [0, 0, 1, 1], [], []>} : vector<128x128xf32>, vector<128x512xf32>, vector<128x512xf32> -> vector<128x512xf32>
    %14 = vector.broadcast %12 : vector<128x1xf32> to vector<128x512xf32>
    %15 = arith.addf %13, %14 : vector<128x512xf32>
    %16 = math.tanh %15 : vector<128x512xf32>
    %c1 = arith.constant 1 : index
    %c0_11 = arith.constant 0 : index
    %c0_12 = arith.constant 0 : index
    %17 = vector.load %arg4[%c1, %c0_11, %c0_12] : memref<2x128x128xf32, #tpu.memory_space<vmem>>, vector<1x128x128xf32>
    %18 = vector.shape_cast %17 : vector<1x128x128xf32> to vector<128x128xf32>
    %c1_13 = arith.constant 1 : index
    %c0_14 = arith.constant 0 : index
    %c0_15 = arith.constant 0 : index
    %19 = vector.load %arg5[%c1_13, %c0_14, %c0_15] : memref<2x128x1xf32, #tpu.memory_space<vmem>>, vector<1x128x1xf32>
    %20 = vector.shape_cast %19 : vector<1x128x1xf32> to vector<128x1xf32>
    %cst_16 = arith.constant dense<0.000000e+00> : vector<128x512xf32>
    %21 = tpu.matmul %18, %16, %cst_16 {dimension_numbers = #tpu.dot_dimension_numbers<[1], [0], [0], [1], [0, 0, 1, 1], [], []>} : vector<128x128xf32>, vector<128x512xf32>, vector<128x512xf32> -> vector<128x512xf32>
    %22 = vector.broadcast %20 : vector<128x1xf32> to vector<128x512xf32>
    %23 = arith.addf %21, %22 : vector<128x512xf32>
    %24 = math.tanh %23 : vector<128x512xf32>
    %c0_17 = arith.constant 0 : index
    %c0_18 = arith.constant 0 : index
    %25 = vector.load %arg6[%c0_17, %c0_18] : memref<1x128xf32, #tpu.memory_space<vmem>>, vector<1x128xf32>
    %cst_19 = arith.constant dense<0.000000e+00> : vector<1x512xf32>
    %26 = tpu.matmul %25, %24, %cst_19 {dimension_numbers = #tpu.dot_dimension_numbers<[1], [0], [0], [1], [0, 0, 1, 1], [], []>} : vector<1x128xf32>, vector<128x512xf32>, vector<1x512xf32> -> vector<1x512xf32>
    %c0_20 = arith.constant 0 : index
    %c0_21 = arith.constant 0 : index
    %27 = vector.load %arg7[%c0_20, %c0_21] : memref<1x1xf32, #tpu.memory_space<vmem>>, vector<1x1xf32>
    %28 = vector.broadcast %27 : vector<1x1xf32> to vector<1x512xf32>
    %29 = arith.addf %26, %28 : vector<1x512xf32>
    %c0_22 = arith.constant 0 : index
    %c0_23 = arith.constant 0 : index
    %30 = vector.load %arg8[%c0_22, %c0_23] : memref<1x512xf32, #tpu.memory_space<vmem>>, vector<1x512xf32>
    tpu.vector_store %arg8[%c0_22, %c0_23], %29 {strides = array<i32>} : memref<1x512xf32, #tpu.memory_space<vmem>>, vector<1x512xf32>,
    return
  }
  func.func @transform_0(%arg0: i32) -> (i32, i32) {
    %c0_i32 = arith.constant 0 : i32
    %c0_i32_0 = arith.constant 0 : i32
    return %c0_i32, %arg0 : i32, i32
  }
  func.func @transform_1(%arg0: i32) -> (i32, i32) {
    %c0_i32 = arith.constant 0 : i32
    %c0_i32_0 = arith.constant 0 : i32
    %c0_i32_1 = arith.constant 0 : i32
    return %c0_i32, %c0_i32_0 : i32, i32
  }
  func.func @transform_2(%arg0: i32) -> (i32, i32) {
    %c0_i32 = arith.constant 0 : i32
    %c0_i32_0 = arith.constant 0 : i32
    %c0_i32_1 = arith.constant 0 : i32
    return %c0_i32, %c0_i32_0 : i32, i32
  }
  func.func @transform_3(%arg0: i32) -> (i32, i32, i32) {
    %c0_i32 = arith.constant 0 : i32
    %c0_i32_0 = arith.constant 0 : i32
    %c0_i32_1 = arith.constant 0 : i32
    %c0_i32_2 = arith.constant 0 : i32
    return %c0_i32, %c0_i32_0, %c0_i32_1 : i32, i32, i32
  }
  func.func @transform_4(%arg0: i32) -> (i32, i32, i32) {
    %c0_i32 = arith.constant 0 : i32
    %c0_i32_0 = arith.constant 0 : i32
    %c0_i32_1 = arith.constant 0 : i32
    %c0_i32_2 = arith.constant 0 : i32
    return %c0_i32, %c0_i32_0, %c0_i32_1 : i32, i32, i32
  }
  func.func @transform_5(%arg0: i32) -> (i32, i32) {
    %c0_i32 = arith.constant 0 : i32
    %c0_i32_0 = arith.constant 0 : i32
    %c0_i32_1 = arith.constant 0 : i32
    return %c0_i32, %c0_i32_0 : i32, i32
  }
  func.func @transform_6(%arg0: i32) -> (i32, i32) {
    %c0_i32 = arith.constant 0 : i32
    %c0_i32_0 = arith.constant 0 : i32
    %c0_i32_1 = arith.constant 0 : i32
    return %c0_i32, %c0_i32_0 : i32, i32
  }
  func.func @transform_7(%arg0: i32) -> (i32, i32) {
    %c0_i32 = arith.constant 0 : i32
    %c0_i32_0 = arith.constant 0 : i32
    return %c0_i32, %arg0 : i32, i32
  }
}

</mosaic_0001>

<bundles_post_ra>
// kernel: tpu_custom_call.1
= control target key start
LH: loop header
LB: loop body
LE: loop exit
PB: predicated region body
PF: predicated region fallthrough
CT: control target
= control target key end

     0   :  { %s3257_s0 = inlined_call_operand.vmem [shape: f32[1,1024], index: 0, kind: input, shape index: {}]   ;;  %s3258_s1 = inlined_call_operand.vmem [shape: f32[128,1], index: 1, kind: input, shape index: {}]   ;;  %s3259_s2 = inlined_call_operand.vmem [shape: f32[128,1], index: 2, kind: input, shape index: {}]   ;;  %s3260_s3 = inlined_call_operand.vmem [shape: f32[2,128,128], index: 3, kind: input, shape index: {}]   ;;  %s3261_s4 = inlined_call_operand.vmem [shape: f32[2,128,1], index: 4, kind: input, shape index: {}]   ;;  %s3262_s5 = inlined_call_operand.vmem [shape: f32[1,128], index: 5, kind: input, shape index: {}]   ;;  %s3263_s6 = inlined_call_operand.<no memory space> [shape: f32[1,1], index: 6, kind: input, shape index: {}]   ;;  %s3264_s7 = inlined_call_operand.hbm [shape: f32[1,1024], index: 7, kind: output, shape index: {}]  }
   0x1   :  { %v12_v0 = vstv %s3263_s6 }
   0x2   :  { %13 = vst [vmem:[#allocation2] sm:$0x1] %v12_v0 }
   0x3   :  { %14 = vsyncpa [#allocation4], 0 }
   0x4   :  { %16 = vsyncpa [#allocation4 + $0x1], 0  ;;  %s2716_s26 = smov 0   ;;  %s2718_s27 = smov 0  }
   0x5   :  { %s2720_s28 = smov 0   ;;  %s2722_s29 = smov 0  }
   0x6 LB: > { %s2737_s6 = sadd.s32 4294967295, %s2667_s29   ;;  %s1941_s30 = sadd.s32 4294967294, %s2667_s29   ;;  %s2667_s29 = sphi %s2722_s29, %s3270_s29   ;;  %s2663_s28 = sphi %s2720_s28, %s3269_s28   ;;  %s2659_s27 = sphi %s2718_s27, %s3268_s27   ;;  %s2655_s26 = sphi %s2716_s26, %s3267_s26  }
   0x7   : > { %s2741_s8 = sadd.s32 1, %s2667_s29   ;;  %s181_s9 = sadd.s32 1, %s2663_s28 }
   0x8   : > { %s178_s10 = ssub.s32 %s2667_s29, %s2741_s8  ;;  %p191_p0 = scmp.ne.s32.totalorder %s2663_s28, %s2659_s27 }
   0x9   : > { %p179_p1 = scmp.eq.s32.totalorder %s178_s10, 0  ;;  %p192_p2 = scmp.eq.s32.totalorder %s2737_s6, 1 }
   0xa   : > { %p197_p3 = scmp.ne.s32.totalorder %s2659_s27, %s2655_s26  ;;  %p198_p4 = scmp.eq.s32.totalorder %s1941_s30, 1 }
   0xb   : > { %s2752_s11 = scalar_select %p179_p1, %s2663_s28, %s181_s9  }
   0xc   : > { %p2754_p5 = por %p192_p2, %p191_p0  ;;  %p2758_p6 = por %p198_p4, %p197_p3 }
   0xd   : > { %p1944_p7 = scmp.ge.s32.totalorder %s2667_s29, 1  ;;  %p242_p8 = scmp.lt.s32.totalorder %s2667_s29, 3 }
   0xf   : > { %p243_p9 = pnand %p1944_p7, %p242_p8 }
  0x10   : > { %v461_v1 = vld [vmem:[%s3259_s2] sm:$0xff] (!%p243_p9)  ;;  %v2669_v3 = vmov (!%p243_p9), 0   ;;  %v462_v4 = vld [vmem:[%s3259_s2 + $0x8] sm:$0xff] (!%p243_p9)  ;;  %v282_v6 = vld [vmem:[%s3258_s1 + $0x18] sm:$0xff] (!%p243_p9)  ;;  %v2670_v48 = vmov (!%p243_p9), 0.0   ;;  %s1946_s21 = sshll.u32 (!%p243_p9), %s2737_s6, 2  ;;  %v377_v61 = vlaneseq (!%p243_p9) }
  0x11   : > { %246 = sbr.rel (%p243_p9) target bundleno = 1062 (0x426), region = 48  ;;  %v279_v2 = vld [vmem:[%s3258_s1] sm:$0xff] (!%p243_p9)  ;;  %2220 = vset.pattern.permute.xlu1 (!%p243_p9), %v2669_v3  ;;  %2219 = vset.pattern.permute.xlu0 (!%p243_p9), %v2669_v3  ;;  %v280_v5 = vld [vmem:[%s3258_s1 + $0x8] sm:$0xff] (!%p243_p9)  ;;  %v281_v7 = vld [vmem:[%s3258_s1 + $0x10] sm:$0xff] (!%p243_p9)  ;;  %p274_p10 = scmp.lt.s32.totalorder (!%p243_p9), %s1946_s21, 7 }
  0x12   : > { %479 = vperm.xlu1 (!%p243_p9), %2220, %v461_v1   ;;  %298 = vperm.xlu0 (!%p243_p9), %2219, %v279_v2   ;;  %v464_v8 = vld [vmem:[%s3259_s2 + $0x18] sm:$0xff] (!%p243_p9)  ;;  %v463_v9 = vld [vmem:[%s3259_s2 + $0x10] sm:$0xff] (!%p243_p9)  ;;  %v284_v10 = vld [vmem:[%s3258_s1 + $0x28] sm:$0xff] (!%p243_p9)  ;;  %v2948_v0 = vshrl.u32 (!%p243_p9), %v377_v61, 7  ;;  %s270_s17 = sand.u32 (!%p243_p9), 1, %s2659_s27   ;;  %s1984_s19 = sshll.u32 (!%p243_p9), %s2737_s6, 6 }
  0x13   : > { %v283_v11 = vld [vmem:[%s3258_s1 + $0x20] sm:$0xff] (!%p243_p9)  ;;  %v466_v12 = vld [vmem:[%s3259_s2 + $0x28] sm:$0xff] (!%p243_p9)  ;;  %v286_v14 = vld [vmem:[%s3258_s1 + $0x38] sm:$0xff] (!%p243_p9)  ;;  %861 = vmatprep.mubr.f32.mxu0 (!%p243_p9), %v2670_v48  ;;  %1022 = vmatprep.mubr.f32.mxu1 (!%p243_p9), %v2670_v48  ;;  %s1945_s18 = sshll.u32 (!%p243_p9), %s270_s17, 2  ;;  %vm1867_vm0 = vcmp.lt.s32.totalorder (!%p243_p9), %v377_v61, 512  ;;  %s3215_s25 = scalar_lea.hbm (!%p243_p9), %s3264_s7, %s1984_s19 }
  0x14   : > { %v465_v13 = vld [vmem:[%s3259_s2 + $0x20] sm:$0xff] (!%p243_p9)  ;;  %v285_v15 = vld [vmem:[%s3258_s1 + $0x30] sm:$0xff] (!%p243_p9)  ;;  %v468_v16 = vld [vmem:[%s3259_s2 + $0x38] sm:$0xff] (!%p243_p9)  ;;  %v379_v3 = vsub.s32 (!%p243_p9), 0, %v2948_v0  ;;  %s272_s20 = scalar_lea.vmem (!%p243_p9), [#allocation3], %s1945_s18  ;;  %s1871_s30 = scalar_lea.sflag (!%p243_p9), [#allocation4], %s270_s17 }
  0x15   : > { %v467_v17 = vld [vmem:[%s3259_s2 + $0x30] sm:$0xff] (!%p243_p9)  ;;  %v288_v18 = vld [vmem:[%s3258_s1 + $0x48] sm:$0xff] (!%p243_p9)  ;;  %v287_v19 = vld [vmem:[%s3258_s1 + $0x40] sm:$0xff] (!%p243_p9)  ;;  %s2672_s6 = smov (!%p243_p9), [#allocation3]  }
  0x16   : > { %484 = vperm.xlu1 (!%p243_p9), %2220, %v462_v4   ;;  %303 = vperm.xlu0 (!%p243_p9), %2219, %v280_v5   ;;  %v470_v20 = vld [vmem:[%s3259_s2 + $0x48] sm:$0xff] (!%p243_p9)  ;;  %v469_v21 = vld [vmem:[%s3259_s2 + $0x40] sm:$0xff] (!%p243_p9)  ;;  %v290_v22 = vld [vmem:[%s3258_s1 + $0x58] sm:$0xff] (!%p243_p9)  ;;  %v383_v4 = vsub.s32 (!%p243_p9), 1, %v2948_v0  ;;  %v387_v5 = vsub.s32 (!%p243_p9), 2, %v2948_v0  ;;  %s2609_s9 = sshll.u32 (!%p243_p9), %s2672_s6, 4  ;;  %s2610_s9 = int_to_ptr.vmem [resolvable:$false] %s2609_s9 }
  0x17   : > { %v289_v23 = vld [vmem:[%s3258_s1 + $0x50] sm:$0xff] (!%p243_p9)  ;;  %v472_v24 = vld [vmem:[%s3259_s2 + $0x58] sm:$0xff] (!%p243_p9)  ;;  %v292_v26 = vld [vmem:[%s3258_s1 + $0x68] sm:$0xff] (!%p243_p9)  ;;  %s2611_s10 = scalar_lea.vmem (!%p243_p9), %s2610_s9, 128 }
  0x18   : > { %v471_v25 = vld [vmem:[%s3259_s2 + $0x50] sm:$0xff]  ;;  %v291_v27 = vld [vmem:[%s3258_s1 + $0x60] sm:$0xff]  ;;  %v474_v28 = vld [vmem:[%s3259_s2 + $0x68] sm:$0xff]  ;;  %s3272_s21 = smov (!%p274_p10, %s1946_s21), 7 }
  0x19   : > { %v473_v29 = vld [vmem:[%s3259_s2 + $0x60] sm:$0xff]  ;;  %v294_v30 = vld [vmem:[%s3258_s1 + $0x78] sm:$0xff]  ;;  %v293_v31 = vld [vmem:[%s3258_s1 + $0x70] sm:$0xff]  ;;  %s276_s22 = scalar_lea.vmem %s3257_s0, %s3272_s21 }
  0x1a   : > { %313 = vperm.xlu1 %2220, %v282_v6   ;;  %308 = vperm.xlu0 %2219, %v281_v7   ;;  %v476_v32 = vld [vmem:[%s3259_s2 + $0x78] sm:$0xff]  ;;  %v475_v33 = vld [vmem:[%s3259_s2 + $0x70] sm:$0xff]  ;;  %v702_v34 = vld [vmem:[%s3261_s4 + $0x8] sm:$0xff]  ;;  %v391_v6 = vsub.s32 3, %v2948_v0 }
  0x1b   : > { %v701_v35 = vld [vmem:[%s3261_s4] sm:$0xff]  ;;  %v704_v36 = vld [vmem:[%s3261_s4 + $0x18] sm:$0xff]  ;;  %v703_v37 = vld [vmem:[%s3261_s4 + $0x10] sm:$0xff] }
  0x1c   : > { %v706_v38 = vld [vmem:[%s3261_s4 + $0x28] sm:$0xff]  ;;  %v705_v39 = vld [vmem:[%s3261_s4 + $0x20] sm:$0xff]  ;;  %v708_v40 = vld [vmem:[%s3261_s4 + $0x38] sm:$0xff] }
  0x1d   : > { %v707_v41 = vld [vmem:[%s3261_s4 + $0x30] sm:$0xff]  ;;  %v710_v42 = vld [vmem:[%s3261_s4 + $0x48] sm:$0xff]  ;;  %v709_v43 = vld [vmem:[%s3261_s4 + $0x40] sm:$0xff] }
  0x1e   : > { %494 = vperm.xlu1 %2220, %v464_v8   ;;  %489 = vperm.xlu0 %2219, %v463_v9   ;;  %v712_v44 = vld [vmem:[%s3261_s4 + $0x58] sm:$0xff]  ;;  %v711_v45 = vld [vmem:[%s3261_s4 + $0x50] sm:$0xff]  ;;  %v714_v46 = vld [vmem:[%s3261_s4 + $0x68] sm:$0xff] }
  0x1f   : > { %v713_v47 = vld [vmem:[%s3261_s4 + $0x60] sm:$0xff]  ;;  %v716_v49 = vld [vmem:[%s3261_s4 + $0x78] sm:$0xff]  ;;  %v715_v50 = vld [vmem:[%s3261_s4 + $0x70] sm:$0xff] }
  0x20   : > { %v1964_v51 = vld [vmem:[%s3261_s4 + $0x88] sm:$0xff]  ;;  %v1963_v52 = vld [vmem:[%s3261_s4 + $0x80] sm:$0xff]  ;;  %v1966_v53 = vld [vmem:[%s3261_s4 + $0x98] sm:$0xff] }
  0x21   : > { %v1965_v54 = vld [vmem:[%s3261_s4 + $0x90] sm:$0xff]  ;;  %v1968_v55 = vld [vmem:[%s3261_s4 + $0xa8] sm:$0xff]  ;;  %v1967_v56 = vld [vmem:[%s3261_s4 + $0xa0] sm:$0xff] }
  0x22   : > { %323 = vperm.xlu1 %2220, %v284_v10   ;;  %318 = vperm.xlu0 %2219, %v283_v11   ;;  %v1970_v57 = vld [vmem:[%s3261_s4 + $0xb8] sm:$0xff]  ;;  %v1969_v58 = vld [vmem:[%s3261_s4 + $0xb0] sm:$0xff]  ;;  %v1972_v59 = vld [vmem:[%s3261_s4 + $0xc8] sm:$0xff] }
  0x23   : > { %v1971_v60 = vld [vmem:[%s3261_s4 + $0xc0] sm:$0xff]  ;;  %v1974_v62 = vld [vmem:[%s3261_s4 + $0xd8] sm:$0xff]  ;;  %v1973_v63 = vld [vmem:[%s3261_s4 + $0xd0] sm:$0xff] }
  0x24   : > { %v1976_v1 = vld [vmem:[%s3261_s4 + $0xe8] sm:$0xff]  ;;  %v1975_v2 = vld [vmem:[%s3261_s4 + $0xe0] sm:$0xff]  ;;  %v1978_v8 = vld [vmem:[%s3261_s4 + $0xf8] sm:$0xff] }
  0x25   : > { %v295_v7 = vld [vmem:[%s276_s22] sm:$0xf]  ;;  %v1977_v9 = vld [vmem:[%s3261_s4 + $0xf0] sm:$0xff]  ;;  %s1885_s22 = sshll.u32 %s272_s20, 4  ;;  %s3217_s22 = int_to_ptr.vmem [resolvable:$true] %s1885_s22 }
  0x26   : > { %504 = vperm.xlu1 %2220, %v466_v12   ;;  %499 = vperm.xlu0 %2219, %v465_v13   ;;  %v2971_v10 = vrot.slane %v295_v7, %v379_v3  ;;  %v2973_v11 = vrot.slane %v295_v7, %v383_v4  ;;  %v2975_v12 = vrot.slane %v295_v7, %v387_v5  ;;  %s2605_s21 = scalar_lea.vmem %s3217_s22, 64  ;;  %p2612_p0 = scmp.lt.s32.totalorder %s3217_s22, %s2610_s9 }
  0x27   : > { %v2977_v13 = vrot.slane %v295_v7, %v391_v6  ;;  %p2606_p11 = scmp.ne.s32.totalorder %s3217_s22, %s2605_s21  ;;  %p2613_p1 = scmp.lt.s32.totalorder %s2611_s10, %s2605_s21 }
  0x29   : > { %p2607_p12 = pnand %p2606_p11, %p2754_p5  ;;  %p2614_p2 = por %p2613_p1, %p2612_p0 }
  0x2a   : > { %333 = vperm.xlu1 %2220, %v286_v14   ;;  %328 = vperm.xlu0 %2219, %v285_v15   ;;  %v1684_v14 = vld [vmem:[#allocation2] sm:$0x1] }
  0x2b   : > { %p2608_p13 = pneg %p2607_p12 }
  0x2d   : > { %p2615_p3 = pnand %p2614_p2, %p2608_p13 }
  0x2e   : > { %514 = vperm.xlu1 %2220, %v468_v16   ;;  %509 = vperm.xlu0 %2219, %v467_v17  }
  0x32   : > { %343 = vperm.xlu1 %2220, %v288_v18   ;;  %338 = vperm.xlu0 %2219, %v287_v19  }
  0x36   : > { %524 = vperm.xlu1 %2220, %v470_v20   ;;  %519 = vperm.xlu0 %2219, %v469_v21  }
  0x3a   : > { %353 = vperm.xlu1 %2220, %v290_v22   ;;  %348 = vperm.xlu0 %2219, %v289_v23  }
  0x3e   : > { %534 = vperm.xlu1 %2220, %v472_v24   ;;  %529 = vperm.xlu0 %2219, %v471_v25  }
  0x42   : > { %363 = vperm.xlu1 %2220, %v292_v26   ;;  %358 = vperm.xlu0 %2219, %v291_v27  }
  0x46   : > { %544 = vperm.xlu1 %2220, %v474_v28   ;;  %539 = vperm.xlu0 %2219, %v473_v29  }
  0x4a   : > { %373 = vperm.xlu1 %2220, %v294_v30   ;;  %368 = vperm.xlu0 %2219, %v293_v31  }
  0x4e   : > { %554 = vperm.xlu1 %2220, %v476_v32   ;;  %549 = vperm.xlu0 %2219, %v475_v33  }
  0x52   : > { %724 = vperm.xlu1 %2220, %v702_v34   ;;  %719 = vperm.xlu0 %2219, %v701_v35  }
  0x56   : > { %734 = vperm.xlu1 %2220, %v704_v36   ;;  %729 = vperm.xlu0 %2219, %v703_v37  }
  0x5a   : > { %744 = vperm.xlu1 %2220, %v706_v38   ;;  %739 = vperm.xlu0 %2219, %v705_v39  }
  0x5e   : > { %754 = vperm.xlu1 %2220, %v708_v40   ;;  %749 = vperm.xlu0 %2219, %v707_v41  }
  0x62   : > { %764 = vperm.xlu1 %2220, %v710_v42   ;;  %759 = vperm.xlu0 %2219, %v709_v43  }
  0x66   : > { %774 = vperm.xlu1 %2220, %v712_v44   ;;  %769 = vperm.xlu0 %2219, %v711_v45  }
  0x6a   : > { %784 = vperm.xlu1 %2220, %v714_v46   ;;  %779 = vperm.xlu0 %2219, %v713_v47  }
  0x6e   : > { %794 = vperm.xlu1 %2220, %v716_v49   ;;  %789 = vperm.xlu0 %2219, %v715_v50  }
  0x72   : > { %1224 = vperm.xlu1 %2220, %v1964_v51   ;;  %1219 = vperm.xlu0 %2219, %v1963_v52  }
  0x76   : > { %1234 = vperm.xlu1 %2220, %v1966_v53   ;;  %1229 = vperm.xlu0 %2219, %v1965_v54  }
  0x7a   : > { %1244 = vperm.xlu1 %2220, %v1968_v55   ;;  %1239 = vperm.xlu0 %2219, %v1967_v56  }
  0x7e   : > { %1254 = vperm.xlu1 %2220, %v1970_v57   ;;  %1249 = vperm.xlu0 %2219, %v1969_v58  }
  0x82   : > { %1264 = vperm.xlu1 %2220, %v1972_v59   ;;  %1259 = vperm.xlu0 %2219, %v1971_v60  }
  0x86   : > { %1274 = vperm.xlu1 %2220, %v1974_v62   ;;  %1269 = vperm.xlu0 %2219, %v1973_v63  }
  0x8a   : > { %1284 = vperm.xlu1 %2220, %v1976_v1   ;;  %1279 = vperm.xlu0 %2219, %v1975_v2  }
  0x8e   : > { %1294 = vperm.xlu1 %2220, %v1978_v8   ;;  %1289 = vperm.xlu0 %2219, %v1977_v9  }
  0x91   : > { %v480_v15 = vpop.permute.xlu1 %479  ;;  %v299_v16 = vpop.permute.xlu0 %298 }
  0x92   : > { %v397_v17 = vmul.f32 %v2971_v10, %v299_v16  ;;  %v398_v18 = vmul.f32 %v2973_v11, %v299_v16  ;;  %v399_v19 = vmul.f32 %v2975_v12, %v299_v16  ;;  %v400_v20 = vmul.f32 %v2977_v13, %v299_v16  ;;  %1687 = vperm.xlu0 %2219, %v1684_v14  }
  0x94   : > { %v557_v21 = vadd.f32 %v480_v15, %v397_v17  ;;  %v558_v22 = vadd.f32 %v480_v15, %v398_v18  ;;  %v559_v23 = vadd.f32 %v480_v15, %v399_v19  ;;  %v560_v24 = vadd.f32 %v480_v15, %v400_v20 }
  0x95   : > { %v485_v25 = vpop.permute.xlu1 %484  ;;  %v304_v26 = vpop.permute.xlu0 %303 }
  0x96   : > { %2221 = vtanh.f32 %v557_v21  ;;  %v401_v27 = vmul.f32 %v2971_v10, %v304_v26  ;;  %v402_v28 = vmul.f32 %v2973_v11, %v304_v26  ;;  %v403_v29 = vmul.f32 %v2975_v12, %v304_v26 }
  0x97   : > { %2223 = vtanh.f32 %v558_v22  ;;  %v404_v30 = vmul.f32 %v2977_v13, %v304_v26 }
  0x98   : > { %2225 = vtanh.f32 %v559_v23  ;;  %v561_v31 = vadd.f32 %v485_v25, %v401_v27  ;;  %v562_v32 = vadd.f32 %v485_v25, %v402_v28  ;;  %v563_v33 = vadd.f32 %v485_v25, %v403_v29 }
  0x99   : > { %2227 = vtanh.f32 %v560_v24  ;;  %v564_v34 = vadd.f32 %v485_v25, %v404_v30  ;;  %v314_v35 = vpop.permute.xlu1 %313  ;;  %v309_v36 = vpop.permute.xlu0 %308 }
  0x9a   : > { %2229 = vtanh.f32 %v561_v31  ;;  %v409_v37 = vmul.f32 %v2971_v10, %v314_v35  ;;  %v410_v38 = vmul.f32 %v2973_v11, %v314_v35  ;;  %v411_v39 = vmul.f32 %v2975_v12, %v314_v35 }
  0x9b   : > { %2231 = vtanh.f32 %v562_v32  ;;  %v412_v40 = vmul.f32 %v2977_v13, %v314_v35  ;;  %v405_v43 = vmul.f32 %v2971_v10, %v309_v36  ;;  %v406_v47 = vmul.f32 %v2973_v11, %v309_v36 }
  0x9c   : > { %2233 = vtanh.f32 %v563_v33  ;;  %v407_v51 = vmul.f32 %v2975_v12, %v309_v36  ;;  %v408_v54 = vmul.f32 %v2977_v13, %v309_v36 }
  0x9d   : > { %2235 = vtanh.f32 %v564_v34  ;;  %v495_v41 = vpop.permute.xlu1 %494  ;;  %v490_v42 = vpop.permute.xlu0 %489 }
  0x9e   : > { %v569_v44 = vadd.f32 %v495_v41, %v409_v37  ;;  %v570_v45 = vadd.f32 %v495_v41, %v410_v38  ;;  %v571_v46 = vadd.f32 %v495_v41, %v411_v39  ;;  %v572_v49 = vadd.f32 %v495_v41, %v412_v40 }
  0x9f   : > { %v565_v52 = vadd.f32 %v490_v42, %v405_v43  ;;  %v566_v55 = vadd.f32 %v490_v42, %v406_v47  ;;  %v567_v59 = vadd.f32 %v490_v42, %v407_v51  ;;  %v568_v62 = vadd.f32 %v490_v42, %v408_v54 }
  0xa0   : > { %v2222_v50 = vpop.eup %2221  ;;  %2237 = vtanh.f32 %v569_v44 }
  0xa1   : > { %v2224_v53 = vpop.eup %2223  ;;  %2239 = vtanh.f32 %v570_v45  ;;  %v324_v56 = vpop.permute.xlu1 %323 }
  0xa2   : > { %v319_v57 = vpop.permute.xlu0 %318  ;;  %v2226_v58 = vpop.eup %2225  ;;  %2241 = vtanh.f32 %v571_v46  ;;  %v417_v1 = vmul.f32 %v2971_v10, %v324_v56  ;;  %v418_v2 = vmul.f32 %v2973_v11, %v324_v56  ;;  %v419_v4 = vmul.f32 %v2975_v12, %v324_v56 }
  0xa3   : > { %v2228_v60 = vpop.eup %2227  ;;  %2243 = vtanh.f32 %v572_v49  ;;  %v420_v6 = vmul.f32 %v2977_v13, %v324_v56  ;;  %v413_v7 = vmul.f32 %v2971_v10, %v319_v57  ;;  %v414_v8 = vmul.f32 %v2973_v11, %v319_v57 }
  0xa4   : > { %v2230_v63 = vpop.eup %2229  ;;  %2245 = vtanh.f32 %v565_v52  ;;  %v415_v20 = vmul.f32 %v2975_v12, %v319_v57  ;;  %v416_v23 = vmul.f32 %v2977_v13, %v319_v57 }
  0xa5   : > { %v2232_v5 = vpop.eup %2231  ;;  %2247 = vtanh.f32 %v566_v55  ;;  %v505_v9 = vpop.permute.xlu1 %504  ;;  %v1987_v22 = vpack.c.bf16 %v2230_v63, %v2222_v50 }
  0xa6   : > { %v500_v14 = vpop.permute.xlu0 %499  ;;  %v2234_v15 = vpop.eup %2233  ;;  %2249 = vtanh.f32 %v567_v59  ;;  %v577_v16 = vadd.f32 %v505_v9, %v417_v1  ;;  %v578_v17 = vadd.f32 %v505_v9, %v418_v2  ;;  %v579_v18 = vadd.f32 %v505_v9, %v419_v4 }
  0xa7   : > { %v2236_v19 = vpop.eup %2235  ;;  %2251 = vtanh.f32 %v568_v62  ;;  %v580_v21 = vadd.f32 %v505_v9, %v420_v6  ;;  %v573_v24 = vadd.f32 %v500_v14, %v413_v7  ;;  %v1985_v25 = vpack.c.bf16 %v2232_v5, %v2224_v53 }
  0xa8   : > { %2253 = vtanh.f32 %v577_v16  ;;  %v574_v26 = vadd.f32 %v500_v14, %v414_v8  ;;  %v2017_v27 = vpack.c.bf16 %v2236_v19, %v2228_v60  ;;  %v2019_v28 = vpack.c.bf16 %v2234_v15, %v2226_v58 }
  0xa9   : > { %2255 = vtanh.f32 %v578_v17  ;;  %v334_v29 = vpop.permute.xlu1 %333  ;;  %v575_v32 = vadd.f32 %v500_v14, %v415_v20  ;;  %1986 = vmatprep.subr.bf16.mxu0 %v1985_v25  ;;  %v576_v34 = vadd.f32 %v500_v14, %v416_v23 }
  0xaa   : > { %v329_v30 = vpop.permute.xlu0 %328  ;;  %v2238_v31 = vpop.eup %2237  ;;  %2257 = vtanh.f32 %v579_v18  ;;  %2018 = vmatprep.subr.bf16.mxu1 %v2017_v27  ;;  %1988 = vmatpush1.bf16.msra.mxu0 %v1987_v22  ;;  %v425_v36 = vmul.f32 %v2971_v10, %v334_v29  ;;  %v426_v37 = vmul.f32 %v2973_v11, %v334_v29  ;;  %v427_v38 = vmul.f32 %v2975_v12, %v334_v29 }
  0xab   : > { %v2240_v33 = vpop.eup %2239  ;;  %2259 = vtanh.f32 %v580_v21  ;;  %2020 = vmatpush1.bf16.msra.mxu1 %v2019_v28  ;;  %v428_v40 = vmul.f32 %v2977_v13, %v334_v29  ;;  %v421_v41 = vmul.f32 %v2971_v10, %v329_v30  ;;  %v422_v50 = vmul.f32 %v2973_v11, %v329_v30 }
  0xac   : > { %v2242_v35 = vpop.eup %2241  ;;  %2261 = vtanh.f32 %v573_v24  ;;  %v423_v51 = vmul.f32 %v2975_v12, %v329_v30  ;;  %v424_v54 = vmul.f32 %v2977_v13, %v329_v30 }
  0xad   : > { %v2244_v39 = vpop.eup %2243  ;;  %2263 = vtanh.f32 %v574_v26  ;;  %v515_v42 = vpop.permute.xlu1 %514 }
  0xae   : > { %v510_v43 = vpop.permute.xlu0 %509  ;;  %v2246_v44 = vpop.eup %2245  ;;  %2265 = vtanh.f32 %v575_v32  ;;  %v585_v45 = vadd.f32 %v515_v42, %v425_v36  ;;  %v586_v46 = vadd.f32 %v515_v42, %v426_v37  ;;  %v587_v47 = vadd.f32 %v515_v42, %v427_v38 }
  0xaf   : > { %v2248_v49 = vpop.eup %2247  ;;  %2267 = vtanh.f32 %v576_v34  ;;  %v588_v52 = vadd.f32 %v515_v42, %v428_v40  ;;  %v581_v55 = vadd.f32 %v510_v43, %v421_v41  ;;  %v582_v58 = vadd.f32 %v510_v43, %v422_v50 }
  0xb0   : > { %v2250_v53 = vpop.eup %2249  ;;  %2269 = vtanh.f32 %v585_v45  ;;  %v1989_v56 = vpack.c.bf16 %v2240_v33, %v2248_v49  ;;  %v1991_v59 = vpack.c.bf16 %v2238_v31, %v2246_v44  ;;  %v583_v2 = vadd.f32 %v510_v43, %v423_v51 }
  0xb1   : > { %v2252_v57 = vpop.eup %2251  ;;  %2271 = vtanh.f32 %v586_v46  ;;  %v2023_v60 = vpack.c.bf16 %v2242_v35, %v2250_v53  ;;  %v344_v62 = vpop.permute.xlu1 %343  ;;  %v584_v6 = vadd.f32 %v510_v43, %v424_v54 }
  0xb2   : > { %v339_v63 = vpop.permute.xlu0 %338  ;;  %v2254_v1 = vpop.eup %2253  ;;  %2273 = vtanh.f32 %v587_v47  ;;  %1990 = vmatprep.subr.bf16.mxu0 %v1989_v56  ;;  %v2021_v4 = vpack.c.bf16 %v2244_v39, %v2252_v57  ;;  %v433_v8 = vmul.f32 %v2971_v10, %v344_v62  ;;  %v434_v9 = vmul.f32 %v2973_v11, %v344_v62 }
  0xb3   : > { %v2256_v5 = vpop.eup %2255  ;;  %2275 = vtanh.f32 %v588_v52  ;;  %1992 = vmatpush1.bf16.msra.mxu0 %v1991_v59  ;;  %v435_v14 = vmul.f32 %v2975_v12, %v344_v62  ;;  %v436_v16 = vmul.f32 %v2977_v13, %v344_v62  ;;  %v429_v17 = vmul.f32 %v2971_v10, %v339_v63 }
  0xb4   : > { %v2258_v7 = vpop.eup %2257  ;;  %2277 = vtanh.f32 %v581_v55  ;;  %2022 = vmatprep.subr.bf16.mxu1 %v2021_v4  ;;  %v430_v25 = vmul.f32 %v2973_v11, %v339_v63  ;;  %v431_v26 = vmul.f32 %v2975_v12, %v339_v63  ;;  %v432_v29 = vmul.f32 %v2977_v13, %v339_v63 }
  0xb5   : > { %v2260_v15 = vpop.eup %2259  ;;  %2279 = vtanh.f32 %v582_v58  ;;  %2024 = vmatpush1.bf16.msra.mxu1 %v2023_v60  ;;  %v525_v18 = vpop.permute.xlu1 %524 }
  0xb6   : > { %v520_v19 = vpop.permute.xlu0 %519  ;;  %v2262_v20 = vpop.eup %2261  ;;  %2281 = vtanh.f32 %v583_v2  ;;  %v593_v21 = vadd.f32 %v525_v18, %v433_v8  ;;  %v594_v22 = vadd.f32 %v525_v18, %v434_v9  ;;  %v595_v23 = vadd.f32 %v525_v18, %v435_v14 }
  0xb7   : > { %v2264_v24 = vpop.eup %2263  ;;  %2283 = vtanh.f32 %v584_v6  ;;  %v596_v27 = vadd.f32 %v525_v18, %v436_v16  ;;  %v589_v30 = vadd.f32 %v520_v19, %v429_v17  ;;  %v590_v33 = vadd.f32 %v520_v19, %v430_v25 }
  0xb8   : > { %v2266_v28 = vpop.eup %2265  ;;  %2285 = vtanh.f32 %v593_v21  ;;  %v1993_v31 = vpack.c.bf16 %v2256_v5, %v2264_v24  ;;  %v1995_v34 = vpack.c.bf16 %v2254_v1, %v2262_v20  ;;  %v591_v39 = vadd.f32 %v520_v19, %v431_v26 }
  0xb9   : > { %v2268_v32 = vpop.eup %2267  ;;  %2287 = vtanh.f32 %v594_v22  ;;  %v2027_v35 = vpack.c.bf16 %v2258_v7, %v2266_v28  ;;  %v354_v36 = vpop.permute.xlu1 %353  ;;  %v592_v42 = vadd.f32 %v520_v19, %v432_v29 }
  0xba   : > { %v349_v37 = vpop.permute.xlu0 %348  ;;  %v2270_v38 = vpop.eup %2269  ;;  %2289 = vtanh.f32 %v595_v23  ;;  %1994 = vmatprep.subr.bf16.mxu0 %v1993_v31  ;;  %v2025_v40 = vpack.c.bf16 %v2260_v15, %v2268_v32  ;;  %v441_v44 = vmul.f32 %v2971_v10, %v354_v36  ;;  %v442_v45 = vmul.f32 %v2973_v11, %v354_v36 }
  0xbb   : > { %v2272_v41 = vpop.eup %2271  ;;  %2291 = vtanh.f32 %v596_v27  ;;  %1996 = vmatpush1.bf16.msra.mxu0 %v1995_v34  ;;  %v443_v46 = vmul.f32 %v2975_v12, %v354_v36  ;;  %v444_v49 = vmul.f32 %v2977_v13, %v354_v36  ;;  %v437_v50 = vmul.f32 %v2971_v10, %v349_v37 }
  0xbc   : > { %v2274_v43 = vpop.eup %2273  ;;  %2293 = vtanh.f32 %v589_v30  ;;  %2026 = vmatprep.subr.bf16.mxu1 %v2025_v40  ;;  %v438_v58 = vmul.f32 %v2973_v11, %v349_v37  ;;  %v439_v59 = vmul.f32 %v2975_v12, %v349_v37  ;;  %v440_v63 = vmul.f32 %v2977_v13, %v349_v37 }
  0xbd   : > { %v2276_v47 = vpop.eup %2275  ;;  %2295 = vtanh.f32 %v590_v33  ;;  %2028 = vmatpush1.bf16.msra.mxu1 %v2027_v35  ;;  %v535_v51 = vpop.permute.xlu1 %534 }
  0xbe   : > { %v530_v52 = vpop.permute.xlu0 %529  ;;  %v2278_v53 = vpop.eup %2277  ;;  %2297 = vtanh.f32 %v591_v39  ;;  %v601_v54 = vadd.f32 %v535_v51, %v441_v44  ;;  %v602_v55 = vadd.f32 %v535_v51, %v442_v45  ;;  %v603_v56 = vadd.f32 %v535_v51, %v443_v46 }
  0xbf   : > { %v2280_v57 = vpop.eup %2279  ;;  %2299 = vtanh.f32 %v592_v42  ;;  %v604_v60 = vadd.f32 %v535_v51, %v444_v49  ;;  %v597_v1 = vadd.f32 %v530_v52, %v437_v50  ;;  %v598_v5 = vadd.f32 %v530_v52, %v438_v58 }
  0xc0   : > { %v2282_v62 = vpop.eup %2281  ;;  %2301 = vtanh.f32 %v601_v54  ;;  %v1997_v2 = vpack.c.bf16 %v2272_v41, %v2280_v57  ;;  %v1999_v6 = vpack.c.bf16 %v2270_v38, %v2278_v53  ;;  %v599_v15 = vadd.f32 %v530_v52, %v439_v59 }
  0xc1   : > { %v2284_v4 = vpop.eup %2283  ;;  %2303 = vtanh.f32 %v602_v55  ;;  %v2031_v7 = vpack.c.bf16 %v2274_v43, %v2282_v62  ;;  %v364_v8 = vpop.permute.xlu1 %363  ;;  %v600_v18 = vadd.f32 %v530_v52, %v440_v63 }
  0xc2   : > { %v359_v9 = vpop.permute.xlu0 %358  ;;  %v2286_v14 = vpop.eup %2285  ;;  %2305 = vtanh.f32 %v603_v56  ;;  %1998 = vmatprep.subr.bf16.mxu0 %v1997_v2  ;;  %v2029_v16 = vpack.c.bf16 %v2276_v47, %v2284_v4  ;;  %v449_v20 = vmul.f32 %v2971_v10, %v364_v8  ;;  %v450_v21 = vmul.f32 %v2973_v11, %v364_v8 }
  0xc3   : > { %v2288_v17 = vpop.eup %2287  ;;  %2307 = vtanh.f32 %v604_v60  ;;  %2000 = vmatpush1.bf16.msra.mxu0 %v1999_v6  ;;  %v451_v22 = vmul.f32 %v2975_v12, %v364_v8  ;;  %v452_v24 = vmul.f32 %v2977_v13, %v364_v8  ;;  %v445_v25 = vmul.f32 %v2971_v10, %v359_v9 }
  0xc4   : > { %v2290_v19 = vpop.eup %2289  ;;  %2309 = vtanh.f32 %v597_v1  ;;  %2030 = vmatprep.subr.bf16.mxu1 %v2029_v16  ;;  %v446_v33 = vmul.f32 %v2973_v11, %v359_v9  ;;  %v447_v34 = vmul.f32 %v2975_v12, %v359_v9  ;;  %v448_v37 = vmul.f32 %v2977_v13, %v359_v9 }
  0xc5   : > { %v2292_v23 = vpop.eup %2291  ;;  %2311 = vtanh.f32 %v598_v5  ;;  %2032 = vmatpush1.bf16.msra.mxu1 %v2031_v7  ;;  %v545_v26 = vpop.permute.xlu1 %544 }
  0xc6   : > { %v540_v27 = vpop.permute.xlu0 %539  ;;  %v2294_v28 = vpop.eup %2293  ;;  %2313 = vtanh.f32 %v599_v15  ;;  %v609_v29 = vadd.f32 %v545_v26, %v449_v20  ;;  %v610_v30 = vadd.f32 %v545_v26, %v450_v21  ;;  %v611_v31 = vadd.f32 %v545_v26, %v451_v22 }
  0xc7   : > { %v2296_v32 = vpop.eup %2295  ;;  %2315 = vtanh.f32 %v600_v18  ;;  %v612_v35 = vadd.f32 %v545_v26, %v452_v24  ;;  %v605_v38 = vadd.f32 %v540_v27, %v445_v25  ;;  %v606_v41 = vadd.f32 %v540_v27, %v446_v33 }
  0xc8   : > { %v2298_v36 = vpop.eup %2297  ;;  %2317 = vtanh.f32 %v609_v29  ;;  %v2001_v39 = vpack.c.bf16 %v2288_v17, %v2296_v32  ;;  %v2003_v42 = vpack.c.bf16 %v2286_v14, %v2294_v28  ;;  %v607_v47 = vadd.f32 %v540_v27, %v447_v34 }
  0xc9   : > { %v2300_v40 = vpop.eup %2299  ;;  %2319 = vtanh.f32 %v610_v30  ;;  %v2035_v43 = vpack.c.bf16 %v2290_v19, %v2298_v36  ;;  %v374_v44 = vpop.permute.xlu1 %373  ;;  %v608_v51 = vadd.f32 %v540_v27, %v448_v37 }
  0xca   : > { %v369_v45 = vpop.permute.xlu0 %368  ;;  %v2302_v46 = vpop.eup %2301  ;;  %2321 = vtanh.f32 %v611_v31  ;;  %2002 = vmatprep.subr.bf16.mxu0 %v2001_v39  ;;  %v2033_v49 = vpack.c.bf16 %v2292_v23, %v2300_v40  ;;  %v457_v53 = vmul.f32 %v2971_v10, %v374_v44  ;;  %v458_v54 = vmul.f32 %v2973_v11, %v374_v44 }
  0xcb   : > { %v2304_v50 = vpop.eup %2303  ;;  %2323 = vtanh.f32 %v612_v35  ;;  %2004 = vmatpush1.bf16.msra.mxu0 %v2003_v42  ;;  %v459_v55 = vmul.f32 %v2975_v12, %v374_v44  ;;  %v460_v57 = vmul.f32 %v2977_v13, %v374_v44  ;;  %v453_v58 = vmul.f32 %v2971_v10, %v369_v45  ;;  %v686_v44 = vld [vmem:[%s3260_s3 + $0x8] sm:$0xff] }
  0xcc   : > { %v2306_v52 = vpop.eup %2305  ;;  %2325 = vtanh.f32 %v605_v38  ;;  %2034 = vmatprep.subr.bf16.mxu1 %v2033_v49  ;;  %v454_v5 = vmul.f32 %v2973_v11, %v369_v45  ;;  %v455_v6 = vmul.f32 %v2975_v12, %v369_v45  ;;  %v456_v9 = vmul.f32 %v2977_v13, %v369_v45  ;;  %v687_v45 = vld [vmem:[%s3260_s3 + $0x10] sm:$0xff]  ;;  %v690_v49 = vld [vmem:[%s3260_s3 + $0x28] sm:$0xff] }
  0xcd   : > { %v2308_v56 = vpop.eup %2307  ;;  %2327 = vtanh.f32 %v606_v41  ;;  %2036 = vmatpush1.bf16.msra.mxu1 %v2035_v43  ;;  %v555_v59 = vpop.permute.xlu1 %554  ;;  %v685_v43 = vld [vmem:[%s3260_s3] sm:$0xff] }
  0xce   : > { %v550_v60 = vpop.permute.xlu0 %549  ;;  %v2310_v62 = vpop.eup %2309  ;;  %2329 = vtanh.f32 %v607_v47  ;;  %v617_v63 = vadd.f32 %v555_v59, %v457_v53  ;;  %v618_v1 = vadd.f32 %v555_v59, %v458_v54  ;;  %v619_v2 = vadd.f32 %v555_v59, %v459_v55  ;;  %v689_v47 = vld [vmem:[%s3260_s3 + $0x20] sm:$0xff]  ;;  %v694_v53 = vld [vmem:[%s3260_s3 + $0x48] sm:$0xff]  ;;  %v695_v54 = vld [vmem:[%s3260_s3 + $0x50] sm:$0xff] }
  0xcf   : > { %v2312_v4 = vpop.eup %2311  ;;  %2331 = vtanh.f32 %v608_v51  ;;  %v620_v7 = vadd.f32 %v555_v59, %v460_v57  ;;  %v613_v14 = vadd.f32 %v550_v60, %v453_v58  ;;  %v614_v16 = vadd.f32 %v550_v60, %v454_v5  ;;  %v692_v51 = vld [vmem:[%s3260_s3 + $0x38] sm:$0xff]  ;;  %v698_v57 = vld [vmem:[%s3260_s3 + $0x68] sm:$0xff]  ;;  %v699_v58 = vld [vmem:[%s3260_s3 + $0x70] sm:$0xff] }
  0xd0   : > { %v2314_v8 = vpop.eup %2313  ;;  %2333 = vtanh.f32 %v617_v63  ;;  %v2005_v10 = vpack.c.bf16 %v2304_v50, %v2312_v4  ;;  %v2007_v17 = vpack.c.bf16 %v2302_v46, %v2310_v62  ;;  %v615_v20 = vadd.f32 %v550_v60, %v455_v6  ;;  %v688_v46 = vld [vmem:[%s3260_s3 + $0x18] sm:$0xff]  ;;  %v691_v50 = vld [vmem:[%s3260_s3 + $0x30] sm:$0xff] }
  0xd1   : > { %v2316_v15 = vpop.eup %2315  ;;  %2335 = vtanh.f32 %v618_v1  ;;  %v2039_v18 = vpack.c.bf16 %v2306_v52, %v2314_v8  ;;  %v616_v12 = vadd.f32 %v550_v60, %v456_v9  ;;  %v693_v52 = vld [vmem:[%s3260_s3 + $0x40] sm:$0xff]  ;;  %v696_v55 = vld [vmem:[%s3260_s3 + $0x58] sm:$0xff] }
  0xd2   : > { %v2318_v19 = vpop.eup %2317  ;;  %2337 = vtanh.f32 %v619_v2  ;;  %2006 = vmatprep.subr.bf16.mxu0 %v2005_v10  ;;  %v2037_v21 = vpack.c.bf16 %v2308_v56, %v2316_v15  ;;  %v697_v56 = vld [vmem:[%s3260_s3 + $0x60] sm:$0xff]  ;;  %v700_v59 = vld [vmem:[%s3260_s3 + $0x78] sm:$0xff]  ;;  %v720_v60 = vpop.permute.xlu0 %719 }
  0xd3   : > { %v2320_v11 = vpop.eup %2319  ;;  %2339 = vtanh.f32 %v620_v7  ;;  %2008 = vmatpush1.bf16.msra.mxu0 %v2007_v17  ;;  %v725_v7 = vpop.permute.xlu1 %724 }
  0xd4   : > { %v2322_v22 = vpop.eup %2321  ;;  %2341 = vtanh.f32 %v613_v14  ;;  %2038 = vmatprep.subr.bf16.mxu1 %v2037_v21 }
  0xd5   : > { %v2324_v13 = vpop.eup %2323  ;;  %2343 = vtanh.f32 %v614_v16  ;;  %2040 = vmatpush1.bf16.msra.mxu1 %v2039_v18 }
  0xd6   : > { %v2326_v23 = vpop.eup %2325  ;;  %2345 = vtanh.f32 %v615_v20 }
  0xd7   : > { %v2328_v24 = vpop.eup %2327  ;;  %2347 = vtanh.f32 %v616_v12  ;;  %v2011_v25 = vpack.c.bf16 %v2318_v19, %v2326_v23  ;;  %v730_v19 = vpop.permute.xlu0 %729 }
  0xd8   : > { %v2330_v26 = vpop.eup %2329  ;;  %v2009_v27 = vpack.c.bf16 %v2320_v11, %v2328_v24 }
  0xd9   : > { %v2332_v28 = vpop.eup %2331  ;;  %v2043_v29 = vpack.c.bf16 %v2322_v22, %v2330_v26 }
  0xda   : > { %v2334_v30 = vpop.eup %2333  ;;  %2010 = vmatprep.subr.bf16.mxu0 %v2009_v27  ;;  %v2041_v31 = vpack.c.bf16 %v2324_v13, %v2332_v28 }
  0xdb   : > { %v2336_v32 = vpop.eup %2335  ;;  %2012 = vmatpush1.bf16.msra.mxu0 %v2011_v25  ;;  %v735_v25 = vpop.permute.xlu1 %734 }
  0xdc   : > { %v2338_v33 = vpop.eup %2337  ;;  %2042 = vmatprep.subr.bf16.mxu1 %v2041_v31 }
  0xdd   : > { %v2340_v34 = vpop.eup %2339  ;;  %2044 = vmatpush1.bf16.msra.mxu1 %v2043_v29 }
  0xde   : > { %v2342_v35 = vpop.eup %2341 }
  0xdf   : > { %v2344_v36 = vpop.eup %2343  ;;  %v2015_v37 = vpack.c.bf16 %v2334_v30, %v2342_v35 }
  0xe0   : > { %v2346_v38 = vpop.eup %2345  ;;  %v2013_v39 = vpack.c.bf16 %v2336_v32, %v2344_v36 }
  0xe1   : > { %v2348_v40 = vpop.eup %2347  ;;  %v2047_v41 = vpack.c.bf16 %v2338_v33, %v2346_v38  ;;  %v740_v38 = vpop.permute.xlu0 %739 }
  0xe2   : > { %2014 = vmatprep.subr.bf16.mxu0 %v2013_v39  ;;  %v2045_v42 = vpack.c.bf16 %v2340_v34, %v2348_v40 }
  0xe3   : > { %2016 = vmatpush1.bf16.msra.mxu0 %v2015_v37 }
  0xe4   : > { %2046 = vmatprep.subr.bf16.mxu1 %v2045_v42 }
  0xe5   : > { %2048 = vmatpush1.bf16.msra.mxu1 %v2047_v41 }
  0xe6   : > { %862 = vmatmul.mubr.f32.vlgmr.msra.gmra.mrb[0].mxu0 %v685_v43 }
  0xe7   : > { %867 = vmatprep.mubr.f32.mxu0 %v2670_v48 }
  0xe8   : > { %1023 = vmatmul.mubr.f32.vlgmr.msra.gmra.mrb[0].mxu1 %v685_v43 }
  0xe9   : > { %1028 = vmatprep.mubr.f32.mxu1 %v2670_v48 }
  0xea   : > { %868 = vmatmul.mubr.f32.gmra.mrb[2].mxu0 %v686_v44 }
  0xeb   : > { %873 = vmatprep.mubr.f32.mxu0 %v2670_v48 }
  0xec   : > { %1029 = vmatmul.mubr.f32.gmra.mrb[2].mxu1 %v686_v44 }
  0xed   : > { %1034 = vmatprep.mubr.f32.mxu1 %v2670_v48 }
  0xee   : > { %874 = vmatmul.mubr.f32.gmra.mrb[4].mxu0 %v687_v45 }
  0xef   : > { %879 = vmatprep.mubr.f32.mxu0 %v2670_v48 }
  0xf0   : > { %1035 = vmatmul.mubr.f32.gmra.mrb[4].mxu1 %v687_v45 }
  0xf1   : > { %1040 = vmatprep.mubr.f32.mxu1 %v2670_v48 }
  0xf2   : > { %880 = vmatmul.mubr.f32.gmra.mrb[6].mxu0 %v688_v46 }
  0xf3   : > { %885 = vmatprep.mubr.f32.mxu0 %v2670_v48 }
  0xf4   : > { %1041 = vmatmul.mubr.f32.gmra.mrb[6].mxu1 %v688_v46 }
  0xf5   : > { %1046 = vmatprep.mubr.f32.mxu1 %v2670_v48 }
  0xf6   : > { %886 = vmatmul.mubr.f32.gmra.mrb[8].mxu0 %v689_v47 }
  0xf7   : > { %891 = vmatprep.mubr.f32.mxu0 %v2670_v48 }
  0xf8   : > { %1047 = vmatmul.mubr.f32.gmra.mrb[8].mxu1 %v689_v47 }
  0xf9   : > { %1052 = vmatprep.mubr.f32.mxu1 %v2670_v48 }
  0xfa   : > { %892 = vmatmul.mubr.f32.gmra.mrb[10].mxu0 %v690_v49 }
  0xfb   : > { %897 = vmatprep.mubr.f32.mxu0 %v2670_v48 }
  0xfc   : > { %1053 = vmatmul.mubr.f32.gmra.mrb[10].mxu1 %v690_v49 }
  0xfd   : > { %1058 = vmatprep.mubr.f32.mxu1 %v2670_v48 }
  0xfe   : > { %898 = vmatmul.mubr.f32.gmra.mrb[12].mxu0 %v691_v50 }
  0xff   : > { %903 = vmatprep.mubr.f32.mxu0 %v2670_v48 }
 0x100   : > { %1059 = vmatmul.mubr.f32.gmra.mrb[12].mxu1 %v691_v50 }
 0x101   : > { %1064 = vmatprep.mubr.f32.mxu1 %v2670_v48 }
 0x102   : > { %904 = vmatmul.mubr.f32.gmra.mrb[14].mxu0 %v692_v51 }
 0x103   : > { %909 = vmatprep.mubr.f32.mxu0 %v2670_v48 }
 0x104   : > { %1065 = vmatmul.mubr.f32.gmra.mrb[14].mxu1 %v692_v51 }
 0x105   : > { %1070 = vmatprep.mubr.f32.mxu1 %v2670_v48 }
 0x106   : > { %910 = vmatmul.mubr.f32.gmra.mrb[16].mxu0 %v693_v52 }
 0x107   : > { %915 = vmatprep.mubr.f32.mxu0 %v2670_v48 }
 0x108   : > { %1071 = vmatmul.mubr.f32.gmra.mrb[16].mxu1 %v693_v52 }
 0x109   : > { %1076 = vmatprep.mubr.f32.mxu1 %v2670_v48 }
 0x10a   : > { %916 = vmatmul.mubr.f32.gmra.mrb[18].mxu0 %v694_v53 }
 0x10b   : > { %921 = vmatprep.mubr.f32.mxu0 %v2670_v48 }
 0x10c   : > { %1077 = vmatmul.mubr.f32.gmra.mrb[18].mxu1 %v694_v53 }
 0x10d   : > { %1082 = vmatprep.mubr.f32.mxu1 %v2670_v48 }
 0x10e   : > { %922 = vmatmul.mubr.f32.gmra.mrb[20].mxu0 %v695_v54 }
 0x10f   : > { %927 = vmatprep.mubr.f32.mxu0 %v2670_v48 }
 0x110   : > { %1083 = vmatmul.mubr.f32.gmra.mrb[20].mxu1 %v695_v54  ;;  %v745_v54 = vpop.permute.xlu1 %744 }
 0x111   : > { %1088 = vmatprep.mubr.f32.mxu1 %v2670_v48 }
 0x112   : > { %928 = vmatmul.mubr.f32.gmra.mrb[22].mxu0 %v696_v55 }
 0x113   : > { %933 = vmatprep.mubr.f32.mxu0 %v2670_v48 }
 0x114   : > { %1089 = vmatmul.mubr.f32.gmra.mrb[22].mxu1 %v696_v55 }
 0x115   : > { %1094 = vmatprep.mubr.f32.mxu1 %v2670_v48 }
 0x116   : > { %934 = vmatmul.mubr.f32.gmra.mrb[24].mxu0 %v697_v56 }
 0x117   : > { %939 = vmatprep.mubr.f32.mxu0 %v2670_v48 }
 0x118   : > { %1095 = vmatmul.mubr.f32.gmra.mrb[24].mxu1 %v697_v56 }
 0x119   : > { %1100 = vmatprep.mubr.f32.mxu1 %v2670_v48 }
 0x11a   : > { %940 = vmatmul.mubr.f32.gmra.mrb[26].mxu0 %v698_v57 }
 0x11b   : > { %945 = vmatprep.mubr.f32.mxu0 %v2670_v48 }
 0x11c   : > { %1101 = vmatmul.mubr.f32.gmra.mrb[26].mxu1 %v698_v57 }
 0x11d   : > { %1106 = vmatprep.mubr.f32.mxu1 %v2670_v48 }
 0x11e   : > { %946 = vmatmul.mubr.f32.gmra.mrb[28].mxu0 %v699_v58 }
 0x11f   : > { %951 = vmatprep.mubr.f32.mxu0 %v2670_v48 }
 0x120   : > { %1107 = vmatmul.mubr.f32.gmra.mrb[28].mxu1 %v699_v58 }
 0x121   : > { %1112 = vmatprep.mubr.f32.mxu1 %v2670_v48 }
 0x122   : > { %952 = vmatmul.mubr.f32.gmra.mrb[30].mxu0 %v700_v59 }
 0x123   : > { %1361 = vmatprep.mubr.f32.mxu0 %v2670_v48 }
 0x124   : > { %1113 = vmatmul.mubr.f32.gmra.mrb[30].mxu1 %v700_v59 }
 0x125   : > { %1522 = vmatprep.mubr.f32.mxu1 %v2670_v48 }
 0x1b9   : > { %v863_v62 = vpop.f32.mrb[0].mxu0 }
 0x1ba   : > { %v864_v63 = vadd.f32 %v863_v62, %v720_v60  ;;  %v865_v1 = vpop.f32.mrb[1].mxu0 }
 0x1bb   : > { %v1024_v2 = vpop.f32.mrb[0].mxu1  ;;  %v866_v4 = vadd.f32 %v865_v1, %v720_v60 }
 0x1bc   : > { %2349 = vtanh.f32 %v864_v63  ;;  %v1025_v5 = vadd.f32 %v1024_v2, %v720_v60  ;;  %v1026_v6 = vpop.f32.mrb[1].mxu1 }
 0x1bd   : > { %2351 = vtanh.f32 %v866_v4  ;;  %v1027_v8 = vadd.f32 %v1026_v6, %v720_v60  ;;  %v869_v9 = vpop.f32.mrb[2].mxu0 }
 0x1be   : > { %2353 = vtanh.f32 %v1025_v5  ;;  %v870_v14 = vadd.f32 %v869_v9, %v725_v7  ;;  %v871_v10 = vpop.f32.mrb[3].mxu0 }
 0x1bf   : > { %2355 = vtanh.f32 %v1027_v8  ;;  %v1030_v15 = vpop.f32.mrb[2].mxu1  ;;  %v872_v16 = vadd.f32 %v871_v10, %v725_v7  ;;  %v750_v8 = vpop.permute.xlu0 %749 }
 0x1c0   : > { %2357 = vtanh.f32 %v870_v14  ;;  %v1031_v17 = vadd.f32 %v1030_v15, %v725_v7  ;;  %v1032_v18 = vpop.f32.mrb[3].mxu1 }
 0x1c1   : > { %2359 = vtanh.f32 %v872_v16  ;;  %v1033_v20 = vadd.f32 %v1032_v18, %v725_v7  ;;  %v875_v21 = vpop.f32.mrb[4].mxu0 }
 0x1c2   : > { %2361 = vtanh.f32 %v1031_v17  ;;  %v876_v11 = vadd.f32 %v875_v21, %v730_v19  ;;  %v877_v12 = vpop.f32.mrb[5].mxu0 }
 0x1c3   : > { %2363 = vtanh.f32 %v1033_v20  ;;  %v1036_v22 = vpop.f32.mrb[4].mxu1  ;;  %v878_v13 = vadd.f32 %v877_v12, %v730_v19 }
 0x1c4   : > { %2365 = vtanh.f32 %v876_v11  ;;  %v1037_v23 = vadd.f32 %v1036_v22, %v730_v19  ;;  %v1038_v24 = vpop.f32.mrb[5].mxu1 }
 0x1c5   : > { %2367 = vtanh.f32 %v878_v13  ;;  %v1039_v26 = vadd.f32 %v1038_v24, %v730_v19  ;;  %v881_v27 = vpop.f32.mrb[6].mxu0 }
 0x1c6   : > { %v2350_v28 = vpop.eup %2349  ;;  %2369 = vtanh.f32 %v1037_v23  ;;  %v882_v29 = vadd.f32 %v881_v27, %v735_v25  ;;  %v883_v30 = vpop.f32.mrb[7].mxu0 }
 0x1c7   : > { %v2352_v31 = vpop.eup %2351  ;;  %2371 = vtanh.f32 %v1039_v26  ;;  %v1042_v32 = vpop.f32.mrb[6].mxu1  ;;  %v884_v33 = vadd.f32 %v883_v30, %v735_v25 }
 0x1c8   : > { %v2354_v34 = vpop.eup %2353  ;;  %2373 = vtanh.f32 %v882_v29  ;;  %v1043_v35 = vadd.f32 %v1042_v32, %v735_v25  ;;  %v1044_v36 = vpop.f32.mrb[7].mxu1 }
 0x1c9   : > { %v2356_v37 = vpop.eup %2355  ;;  %2375 = vtanh.f32 %v884_v33  ;;  %v1045_v39 = vadd.f32 %v1044_v36, %v735_v25  ;;  %v887_v40 = vpop.f32.mrb[8].mxu0 }
 0x1ca   : > { %v2358_v41 = vpop.eup %2357  ;;  %2377 = vtanh.f32 %v1043_v35  ;;  %v888_v42 = vadd.f32 %v887_v40, %v740_v38  ;;  %v889_v43 = vpop.f32.mrb[9].mxu0 }
 0x1cb   : > { %v2360_v44 = vpop.eup %2359  ;;  %2379 = vtanh.f32 %v1045_v39  ;;  %v1048_v45 = vpop.f32.mrb[8].mxu1  ;;  %v890_v46 = vadd.f32 %v889_v43, %v740_v38  ;;  %v2051_v47 = vpack.c.bf16 %v2358_v41, %v2350_v28 }
 0x1cc   : > { %v2362_v49 = vpop.eup %2361  ;;  %2381 = vtanh.f32 %v888_v42  ;;  %v1049_v50 = vadd.f32 %v1048_v45, %v740_v38  ;;  %v1050_v51 = vpop.f32.mrb[9].mxu1  ;;  %v2049_v52 = vpack.c.bf16 %v2360_v44, %v2352_v31 }
 0x1cd   : > { %v2364_v53 = vpop.eup %2363  ;;  %2383 = vtanh.f32 %v890_v46  ;;  %v1051_v55 = vadd.f32 %v1050_v51, %v740_v38  ;;  %v893_v56 = vpop.f32.mrb[10].mxu0  ;;  %v2083_v57 = vpack.c.bf16 %v2362_v49, %v2354_v34 }
 0x1ce   : > { %v2366_v58 = vpop.eup %2365  ;;  %2385 = vtanh.f32 %v1049_v50  ;;  %v894_v59 = vadd.f32 %v893_v56, %v745_v54  ;;  %v895_v60 = vpop.f32.mrb[11].mxu0  ;;  %2050 = vmatprep.subr.bf16.mxu0 %v2049_v52  ;;  %v2081_v62 = vpack.c.bf16 %v2364_v53, %v2356_v37 }
 0x1cf   : > { %v2368_v63 = vpop.eup %2367  ;;  %2387 = vtanh.f32 %v1051_v55  ;;  %v1054_v1 = vpop.f32.mrb[10].mxu1  ;;  %v896_v2 = vadd.f32 %v895_v60, %v745_v54  ;;  %2052 = vmatpush1.bf16.msra.mxu0 %v2051_v47 }
 0x1d0   : > { %v2370_v4 = vpop.eup %2369  ;;  %2389 = vtanh.f32 %v894_v59  ;;  %v1055_v5 = vadd.f32 %v1054_v1, %v745_v54  ;;  %v1056_v6 = vpop.f32.mrb[11].mxu1  ;;  %2082 = vmatprep.subr.bf16.mxu1 %v2081_v62 }
 0x1d1   : > { %v2372_v7 = vpop.eup %2371  ;;  %2391 = vtanh.f32 %v896_v2  ;;  %v1057_v9 = vadd.f32 %v1056_v6, %v745_v54  ;;  %2084 = vmatpush1.bf16.msra.mxu1 %v2083_v57  ;;  %v899_v14 = vpop.f32.mrb[12].mxu0 }
 0x1d2   : > { %v2374_v10 = vpop.eup %2373  ;;  %2393 = vtanh.f32 %v1055_v5  ;;  %v900_v15 = vadd.f32 %v899_v14, %v750_v8  ;;  %v901_v16 = vpop.f32.mrb[13].mxu0 }
 0x1d3   : > { %v2376_v17 = vpop.eup %2375  ;;  %2395 = vtanh.f32 %v1057_v9  ;;  %v1060_v18 = vpop.f32.mrb[12].mxu1  ;;  %v902_v19 = vadd.f32 %v901_v16, %v750_v8  ;;  %v2055_v20 = vpack.c.bf16 %v2374_v10, %v2366_v58 }
 0x1d4   : > { %v2378_v21 = vpop.eup %2377  ;;  %2397 = vtanh.f32 %v900_v15  ;;  %v1061_v11 = vadd.f32 %v1060_v18, %v750_v8  ;;  %v1062_v12 = vpop.f32.mrb[13].mxu1  ;;  %v2053_v22 = vpack.c.bf16 %v2376_v17, %v2368_v63 }
 0x1d5   : > { %v2380_v13 = vpop.eup %2379  ;;  %v755_v23 = vpop.permute.xlu1 %754  ;;  %2399 = vtanh.f32 %v902_v19  ;;  %v1063_v24 = vadd.f32 %v1062_v12, %v750_v8  ;;  %v2087_v26 = vpack.c.bf16 %v2378_v21, %v2370_v4 }
 0x1d6   : > { %v905_v25 = vpop.f32.mrb[14].mxu0  ;;  %v2382_v27 = vpop.eup %2381  ;;  %2401 = vtanh.f32 %v1061_v11  ;;  %2054 = vmatprep.subr.bf16.mxu0 %v2053_v22  ;;  %v2085_v30 = vpack.c.bf16 %v2380_v13, %v2372_v7 }
 0x1d7   : > { %v906_v28 = vadd.f32 %v905_v25, %v755_v23  ;;  %v907_v29 = vpop.f32.mrb[15].mxu0  ;;  %v2384_v31 = vpop.eup %2383  ;;  %2403 = vtanh.f32 %v1063_v24  ;;  %2056 = vmatpush1.bf16.msra.mxu0 %v2055_v20 }
 0x1d8   : > { %v1066_v32 = vpop.f32.mrb[14].mxu1  ;;  %v908_v33 = vadd.f32 %v907_v29, %v755_v23  ;;  %v2386_v34 = vpop.eup %2385  ;;  %2086 = vmatprep.subr.bf16.mxu1 %v2085_v30 }
 0x1d9   : > { %2405 = vtanh.f32 %v906_v28  ;;  %v1067_v35 = vadd.f32 %v1066_v32, %v755_v23  ;;  %v1068_v36 = vpop.f32.mrb[15].mxu1  ;;  %v2388_v37 = vpop.eup %2387  ;;  %2088 = vmatpush1.bf16.msra.mxu1 %v2087_v26 }
 0x1da   : > { %v760_v38 = vpop.permute.xlu0 %759  ;;  %2407 = vtanh.f32 %v908_v33  ;;  %v1069_v39 = vadd.f32 %v1068_v36, %v755_v23  ;;  %v911_v40 = vpop.f32.mrb[16].mxu0 }
 0x1db   : > { %v2390_v41 = vpop.eup %2389  ;;  %2409 = vtanh.f32 %v1067_v35  ;;  %v912_v42 = vadd.f32 %v911_v40, %v760_v38  ;;  %v913_v43 = vpop.f32.mrb[17].mxu0 }
 0x1dc   : > { %v2392_v44 = vpop.eup %2391  ;;  %2411 = vtanh.f32 %v1069_v39  ;;  %v1072_v45 = vpop.f32.mrb[16].mxu1  ;;  %v914_v46 = vadd.f32 %v913_v43, %v760_v38  ;;  %v2059_v47 = vpack.c.bf16 %v2390_v41, %v2382_v27 }
 0x1dd   : > { %v2394_v49 = vpop.eup %2393  ;;  %2413 = vtanh.f32 %v912_v42  ;;  %v1073_v50 = vadd.f32 %v1072_v45, %v760_v38  ;;  %v1074_v51 = vpop.f32.mrb[17].mxu1  ;;  %v2057_v52 = vpack.c.bf16 %v2392_v44, %v2384_v31 }
 0x1de   : > { %v2396_v53 = vpop.eup %2395  ;;  %v765_v54 = vpop.permute.xlu1 %764  ;;  %2415 = vtanh.f32 %v914_v46  ;;  %v1075_v55 = vadd.f32 %v1074_v51, %v760_v38  ;;  %v2091_v57 = vpack.c.bf16 %v2394_v49, %v2386_v34 }
 0x1df   : > { %v917_v56 = vpop.f32.mrb[18].mxu0  ;;  %v2398_v58 = vpop.eup %2397  ;;  %2417 = vtanh.f32 %v1073_v50  ;;  %2058 = vmatprep.subr.bf16.mxu0 %v2057_v52  ;;  %v2089_v62 = vpack.c.bf16 %v2396_v53, %v2388_v37 }
 0x1e0   : > { %v918_v59 = vadd.f32 %v917_v56, %v765_v54  ;;  %v919_v60 = vpop.f32.mrb[19].mxu0  ;;  %v2400_v63 = vpop.eup %2399  ;;  %2419 = vtanh.f32 %v1075_v55  ;;  %2060 = vmatpush1.bf16.msra.mxu0 %v2059_v47 }
 0x1e1   : > { %v1078_v1 = vpop.f32.mrb[18].mxu1  ;;  %v920_v2 = vadd.f32 %v919_v60, %v765_v54  ;;  %v2402_v4 = vpop.eup %2401  ;;  %2090 = vmatprep.subr.bf16.mxu1 %v2089_v62 }
 0x1e2   : > { %2421 = vtanh.f32 %v918_v59  ;;  %v1079_v5 = vadd.f32 %v1078_v1, %v765_v54  ;;  %v1080_v6 = vpop.f32.mrb[19].mxu1  ;;  %v2404_v7 = vpop.eup %2403  ;;  %2092 = vmatpush1.bf16.msra.mxu1 %v2091_v57 }
 0x1e3   : > { %v770_v8 = vpop.permute.xlu0 %769  ;;  %2423 = vtanh.f32 %v920_v2  ;;  %v1081_v9 = vadd.f32 %v1080_v6, %v765_v54  ;;  %v923_v14 = vpop.f32.mrb[20].mxu0 }
 0x1e4   : > { %v2406_v10 = vpop.eup %2405  ;;  %2425 = vtanh.f32 %v1079_v5  ;;  %v924_v15 = vadd.f32 %v923_v14, %v770_v8  ;;  %v925_v16 = vpop.f32.mrb[21].mxu0 }
 0x1e5   : > { %v2408_v17 = vpop.eup %2407  ;;  %2427 = vtanh.f32 %v1081_v9  ;;  %v1084_v18 = vpop.f32.mrb[20].mxu1  ;;  %v926_v19 = vadd.f32 %v925_v16, %v770_v8  ;;  %v2063_v20 = vpack.c.bf16 %v2406_v10, %v2398_v58 }
 0x1e6   : > { %v2410_v21 = vpop.eup %2409  ;;  %2429 = vtanh.f32 %v924_v15  ;;  %v1085_v11 = vadd.f32 %v1084_v18, %v770_v8  ;;  %v1086_v12 = vpop.f32.mrb[21].mxu1  ;;  %v2061_v22 = vpack.c.bf16 %v2408_v17, %v2400_v63 }
 0x1e7   : > { %v2412_v13 = vpop.eup %2411  ;;  %v775_v23 = vpop.permute.xlu1 %774  ;;  %2431 = vtanh.f32 %v926_v19  ;;  %v1087_v24 = vadd.f32 %v1086_v12, %v770_v8  ;;  %v2095_v26 = vpack.c.bf16 %v2410_v21, %v2402_v4 }
 0x1e8   : > { %v929_v25 = vpop.f32.mrb[22].mxu0  ;;  %v2414_v27 = vpop.eup %2413  ;;  %2433 = vtanh.f32 %v1085_v11  ;;  %2062 = vmatprep.subr.bf16.mxu0 %v2061_v22  ;;  %v2093_v30 = vpack.c.bf16 %v2412_v13, %v2404_v7 }
 0x1e9   : > { %v930_v28 = vadd.f32 %v929_v25, %v775_v23  ;;  %v931_v29 = vpop.f32.mrb[23].mxu0  ;;  %v2416_v31 = vpop.eup %2415  ;;  %2435 = vtanh.f32 %v1087_v24  ;;  %2064 = vmatpush1.bf16.msra.mxu0 %v2063_v20 }
 0x1ea   : > { %v1090_v32 = vpop.f32.mrb[22].mxu1  ;;  %v932_v33 = vadd.f32 %v931_v29, %v775_v23  ;;  %v2418_v34 = vpop.eup %2417  ;;  %2094 = vmatprep.subr.bf16.mxu1 %v2093_v30 }
 0x1eb   : > { %2437 = vtanh.f32 %v930_v28  ;;  %v1091_v35 = vadd.f32 %v1090_v32, %v775_v23  ;;  %v1092_v36 = vpop.f32.mrb[23].mxu1  ;;  %v2420_v37 = vpop.eup %2419  ;;  %2096 = vmatpush1.bf16.msra.mxu1 %v2095_v26 }
 0x1ec   : > { %v780_v38 = vpop.permute.xlu0 %779  ;;  %2439 = vtanh.f32 %v932_v33  ;;  %v1093_v39 = vadd.f32 %v1092_v36, %v775_v23  ;;  %v935_v40 = vpop.f32.mrb[24].mxu0 }
 0x1ed   : > { %v2422_v41 = vpop.eup %2421  ;;  %2441 = vtanh.f32 %v1091_v35  ;;  %v936_v42 = vadd.f32 %v935_v40, %v780_v38  ;;  %v937_v43 = vpop.f32.mrb[25].mxu0 }
 0x1ee   : > { %v2424_v44 = vpop.eup %2423  ;;  %2443 = vtanh.f32 %v1093_v39  ;;  %v1096_v45 = vpop.f32.mrb[24].mxu1  ;;  %v938_v46 = vadd.f32 %v937_v43, %v780_v38  ;;  %v2067_v47 = vpack.c.bf16 %v2422_v41, %v2414_v27 }
 0x1ef   : > { %v2426_v49 = vpop.eup %2425  ;;  %2445 = vtanh.f32 %v936_v42  ;;  %v1097_v50 = vadd.f32 %v1096_v45, %v780_v38  ;;  %v1098_v51 = vpop.f32.mrb[25].mxu1  ;;  %v2065_v52 = vpack.c.bf16 %v2424_v44, %v2416_v31 }
 0x1f0   : > { %v2428_v53 = vpop.eup %2427  ;;  %v785_v54 = vpop.permute.xlu1 %784  ;;  %2447 = vtanh.f32 %v938_v46  ;;  %v1099_v55 = vadd.f32 %v1098_v51, %v780_v38  ;;  %v2099_v57 = vpack.c.bf16 %v2426_v49, %v2418_v34 }
 0x1f1   : > { %v941_v56 = vpop.f32.mrb[26].mxu0  ;;  %v2430_v58 = vpop.eup %2429  ;;  %2449 = vtanh.f32 %v1097_v50  ;;  %2066 = vmatprep.subr.bf16.mxu0 %v2065_v52  ;;  %v2097_v62 = vpack.c.bf16 %v2428_v53, %v2420_v37 }
 0x1f2   : > { %v942_v59 = vadd.f32 %v941_v56, %v785_v54  ;;  %v943_v60 = vpop.f32.mrb[27].mxu0  ;;  %v2432_v63 = vpop.eup %2431  ;;  %2451 = vtanh.f32 %v1099_v55  ;;  %2068 = vmatpush1.bf16.msra.mxu0 %v2067_v47 }
 0x1f3   : > { %v1102_v1 = vpop.f32.mrb[26].mxu1  ;;  %v944_v2 = vadd.f32 %v943_v60, %v785_v54  ;;  %v2434_v4 = vpop.eup %2433  ;;  %2098 = vmatprep.subr.bf16.mxu1 %v2097_v62  ;;  %v1947_v60 = vld [vmem:[%s3260_s3 + $0x80] sm:$0xff]  ;;  %v1948_v62 = vld [vmem:[%s3260_s3 + $0x88] sm:$0xff] }
 0x1f4   : > { %2453 = vtanh.f32 %v942_v59  ;;  %v1103_v5 = vadd.f32 %v1102_v1, %v785_v54  ;;  %v1104_v6 = vpop.f32.mrb[27].mxu1  ;;  %v2436_v7 = vpop.eup %2435  ;;  %2100 = vmatpush1.bf16.msra.mxu1 %v2099_v57  ;;  %v1950_v1 = vld [vmem:[%s3260_s3 + $0x98] sm:$0xff] }
 0x1f5   : > { %v790_v8 = vpop.permute.xlu0 %789  ;;  %2455 = vtanh.f32 %v944_v2  ;;  %v1105_v9 = vadd.f32 %v1104_v6, %v785_v54  ;;  %v947_v14 = vpop.f32.mrb[28].mxu0  ;;  %v1951_v2 = vld [vmem:[%s3260_s3 + $0xa0] sm:$0xff]  ;;  %v1954_v6 = vld [vmem:[%s3260_s3 + $0xb8] sm:$0xff] }
 0x1f6   : > { %v2438_v10 = vpop.eup %2437  ;;  %2457 = vtanh.f32 %v1103_v5  ;;  %v948_v15 = vadd.f32 %v947_v14, %v790_v8  ;;  %v949_v16 = vpop.f32.mrb[29].mxu0  ;;  %v1953_v5 = vld [vmem:[%s3260_s3 + $0xb0] sm:$0xff]  ;;  %v1958_v14 = vld [vmem:[%s3260_s3 + $0xd8] sm:$0xff] }
 0x1f7   : > { %v2440_v17 = vpop.eup %2439  ;;  %2459 = vtanh.f32 %v1105_v9  ;;  %v1108_v18 = vpop.f32.mrb[28].mxu1  ;;  %v950_v19 = vadd.f32 %v949_v16, %v790_v8  ;;  %v2071_v20 = vpack.c.bf16 %v2438_v10, %v2430_v58  ;;  %v1957_v9 = vld [vmem:[%s3260_s3 + $0xd0] sm:$0xff]  ;;  %v1959_v10 = vld [vmem:[%s3260_s3 + $0xe0] sm:$0xff] }
 0x1f8   : > { %v2442_v21 = vpop.eup %2441  ;;  %2461 = vtanh.f32 %v948_v15  ;;  %v1109_v11 = vadd.f32 %v1108_v18, %v790_v8  ;;  %v1110_v12 = vpop.f32.mrb[29].mxu1  ;;  %v2069_v22 = vpack.c.bf16 %v2440_v17, %v2432_v63  ;;  %v1949_v63 = vld [vmem:[%s3260_s3 + $0x90] sm:$0xff]  ;;  %v1960_v15 = vld [vmem:[%s3260_s3 + $0xe8] sm:$0xff]  ;;  %v1962_v17 = vld [vmem:[%s3260_s3 + $0xf8] sm:$0xff] }
 0x1f9   : > { %v2444_v13 = vpop.eup %2443  ;;  %v795_v23 = vpop.permute.xlu1 %794  ;;  %2463 = vtanh.f32 %v950_v19  ;;  %v1111_v24 = vadd.f32 %v1110_v12, %v790_v8  ;;  %v2103_v26 = vpack.c.bf16 %v2442_v21, %v2434_v4  ;;  %v1952_v4 = vld [vmem:[%s3260_s3 + $0xa8] sm:$0xff]  ;;  %v1961_v16 = vld [vmem:[%s3260_s3 + $0xf0] sm:$0xff] }
 0x1fa   : > { %v953_v25 = vpop.f32.mrb[30].mxu0  ;;  %v2446_v27 = vpop.eup %2445  ;;  %2465 = vtanh.f32 %v1109_v11  ;;  %2070 = vmatprep.subr.bf16.mxu0 %v2069_v22  ;;  %v2101_v30 = vpack.c.bf16 %v2444_v13, %v2436_v7  ;;  %v1955_v7 = vld [vmem:[%s3260_s3 + $0xc0] sm:$0xff]  ;;  %v1956_v8 = vld [vmem:[%s3260_s3 + $0xc8] sm:$0xff] }
 0x1fb   : > { %v954_v28 = vadd.f32 %v953_v25, %v795_v23  ;;  %v955_v29 = vpop.f32.mrb[31].mxu0  ;;  %v2448_v31 = vpop.eup %2447  ;;  %2467 = vtanh.f32 %v1111_v24  ;;  %2072 = vmatpush1.bf16.msra.mxu0 %v2071_v20 }
 0x1fc   : > { %v1114_v32 = vpop.f32.mrb[30].mxu1  ;;  %v956_v33 = vadd.f32 %v955_v29, %v795_v23  ;;  %v2450_v34 = vpop.eup %2449  ;;  %2102 = vmatprep.subr.bf16.mxu1 %v2101_v30 }
 0x1fd   : > { %2469 = vtanh.f32 %v954_v28  ;;  %v1115_v35 = vadd.f32 %v1114_v32, %v795_v23  ;;  %v1116_v36 = vpop.f32.mrb[31].mxu1  ;;  %v2452_v37 = vpop.eup %2451  ;;  %2104 = vmatpush1.bf16.msra.mxu1 %v2103_v26 }
 0x1fe   : > { %2471 = vtanh.f32 %v956_v33  ;;  %v1117_v38 = vadd.f32 %v1116_v36, %v795_v23  ;;  %v2454_v39 = vpop.eup %2453  ;;  %v1220_v18 = vpop.permute.xlu0 %1219 }
 0x1ff   : > { %2473 = vtanh.f32 %v1115_v35  ;;  %v2456_v40 = vpop.eup %2455  ;;  %v2075_v41 = vpack.c.bf16 %v2454_v39, %v2446_v27  ;;  %v1225_v23 = vpop.permute.xlu1 %1224 }
 0x200   : > { %2475 = vtanh.f32 %v1117_v38  ;;  %v2458_v42 = vpop.eup %2457  ;;  %v2073_v43 = vpack.c.bf16 %v2456_v40, %v2448_v31 }
 0x201   : > { %v2460_v44 = vpop.eup %2459  ;;  %v2107_v45 = vpack.c.bf16 %v2458_v42, %v2450_v34 }
 0x202   : > { %v2462_v46 = vpop.eup %2461  ;;  %2074 = vmatprep.subr.bf16.mxu0 %v2073_v43  ;;  %v2105_v47 = vpack.c.bf16 %v2460_v44, %v2452_v37  ;;  %v1230_v31 = vpop.permute.xlu0 %1229 }
 0x203   : > { %v2464_v49 = vpop.eup %2463  ;;  %2076 = vmatpush1.bf16.msra.mxu0 %v2075_v41  ;;  %v1235_v40 = vpop.permute.xlu1 %1234 }
 0x204   : > { %v2466_v50 = vpop.eup %2465  ;;  %2106 = vmatprep.subr.bf16.mxu1 %v2105_v47 }
 0x205   : > { %v2468_v51 = vpop.eup %2467  ;;  %2108 = vmatpush1.bf16.msra.mxu1 %v2107_v45 }
 0x207   : > { %v2470_v52 = vpop.eup %2469 }
 0x208   : > { %v2472_v53 = vpop.eup %2471  ;;  %v2079_v54 = vpack.c.bf16 %v2470_v52, %v2462_v46 }
 0x209   : > { %v2474_v55 = vpop.eup %2473  ;;  %v2077_v56 = vpack.c.bf16 %v2472_v53, %v2464_v49 }
 0x20a   : > { %v2476_v57 = vpop.eup %2475  ;;  %v2111_v58 = vpack.c.bf16 %v2474_v55, %v2466_v50 }
 0x20b   : > { %2078 = vmatprep.subr.bf16.mxu0 %v2077_v56  ;;  %v2109_v59 = vpack.c.bf16 %v2476_v57, %v2468_v51 }
 0x20c   : > { %2080 = vmatpush1.bf16.msra.mxu0 %v2079_v54  ;;  %v1240_v54 = vpop.permute.xlu0 %1239 }
 0x20d   : > { %2110 = vmatprep.subr.bf16.mxu1 %v2109_v59 }
 0x20e   : > { %2112 = vmatpush1.bf16.msra.mxu1 %v2111_v58 }
 0x20f   : > { %1362 = vmatmul.mubr.f32.vlgmr.msra.gmra.mrb[32].mxu0 %v1947_v60 }
 0x210   : > { %1367 = vmatprep.mubr.f32.mxu0 %v2670_v48 }
 0x211   : > { %1523 = vmatmul.mubr.f32.vlgmr.msra.gmra.mrb[32].mxu1 %v1947_v60 }
 0x212   : > { %1528 = vmatprep.mubr.f32.mxu1 %v2670_v48 }
 0x213   : > { %1368 = vmatmul.mubr.f32.gmra.mrb[34].mxu0 %v1948_v62 }
 0x214   : > { %1373 = vmatprep.mubr.f32.mxu0 %v2670_v48 }
 0x215   : > { %1529 = vmatmul.mubr.f32.gmra.mrb[34].mxu1 %v1948_v62 }
 0x216   : > { %1534 = vmatprep.mubr.f32.mxu1 %v2670_v48 }
 0x217   : > { %1374 = vmatmul.mubr.f32.gmra.mrb[36].mxu0 %v1949_v63 }
 0x218   : > { %1379 = vmatprep.mubr.f32.mxu0 %v2670_v48 }
 0x219   : > { %1535 = vmatmul.mubr.f32.gmra.mrb[36].mxu1 %v1949_v63 }
 0x21a   : > { %1540 = vmatprep.mubr.f32.mxu1 %v2670_v48 }
 0x21b   : > { %1380 = vmatmul.mubr.f32.gmra.mrb[38].mxu0 %v1950_v1 }
 0x21c   : > { %1385 = vmatprep.mubr.f32.mxu0 %v2670_v48 }
 0x21d   : > { %1541 = vmatmul.mubr.f32.gmra.mrb[38].mxu1 %v1950_v1 }
 0x21e   : > { %1546 = vmatprep.mubr.f32.mxu1 %v2670_v48 }
 0x21f   : > { %1386 = vmatmul.mubr.f32.gmra.mrb[40].mxu0 %v1951_v2 }
 0x220   : > { %1391 = vmatprep.mubr.f32.mxu0 %v2670_v48 }
 0x221   : > { %1547 = vmatmul.mubr.f32.gmra.mrb[40].mxu1 %v1951_v2 }
 0x222   : > { %1552 = vmatprep.mubr.f32.mxu1 %v2670_v48 }
 0x223   : > { %1392 = vmatmul.mubr.f32.gmra.mrb[42].mxu0 %v1952_v4 }
 0x224   : > { %1397 = vmatprep.mubr.f32.mxu0 %v2670_v48 }
 0x225   : > { %1553 = vmatmul.mubr.f32.gmra.mrb[42].mxu1 %v1952_v4 }
 0x226   : > { %1558 = vmatprep.mubr.f32.mxu1 %v2670_v48 }
 0x227   : > { %1398 = vmatmul.mubr.f32.gmra.mrb[44].mxu0 %v1953_v5 }
 0x228   : > { %1403 = vmatprep.mubr.f32.mxu0 %v2670_v48 }
 0x229   : > { %1559 = vmatmul.mubr.f32.gmra.mrb[44].mxu1 %v1953_v5 }
 0x22a   : > { %1564 = vmatprep.mubr.f32.mxu1 %v2670_v48 }
 0x22b   : > { %1404 = vmatmul.mubr.f32.gmra.mrb[46].mxu0 %v1954_v6 }
 0x22c   : > { %1409 = vmatprep.mubr.f32.mxu0 %v2670_v48 }
 0x22d   : > { %1565 = vmatmul.mubr.f32.gmra.mrb[46].mxu1 %v1954_v6 }
 0x22e   : > { %1570 = vmatprep.mubr.f32.mxu1 %v2670_v48 }
 0x22f   : > { %1410 = vmatmul.mubr.f32.gmra.mrb[48].mxu0 %v1955_v7 }
 0x230   : > { %1415 = vmatprep.mubr.f32.mxu0 %v2670_v48 }
 0x231   : > { %1571 = vmatmul.mubr.f32.gmra.mrb[48].mxu1 %v1955_v7 }
 0x232   : > { %1576 = vmatprep.mubr.f32.mxu1 %v2670_v48 }
 0x233   : > { %1416 = vmatmul.mubr.f32.gmra.mrb[50].mxu0 %v1956_v8 }
 0x234   : > { %1421 = vmatprep.mubr.f32.mxu0 %v2670_v48 }
 0x235   : > { %1577 = vmatmul.mubr.f32.gmra.mrb[50].mxu1 %v1956_v8  ;;  %v1245_v8 = vpop.permute.xlu1 %1244 }
 0x236   : > { %1582 = vmatprep.mubr.f32.mxu1 %v2670_v48 }
 0x237   : > { %1422 = vmatmul.mubr.f32.gmra.mrb[52].mxu0 %v1957_v9 }
 0x238   : > { %1427 = vmatprep.mubr.f32.mxu0 %v2670_v48 }
 0x239   : > { %1583 = vmatmul.mubr.f32.gmra.mrb[52].mxu1 %v1957_v9 }
 0x23a   : > { %1588 = vmatprep.mubr.f32.mxu1 %v2670_v48 }
 0x23b   : > { %1428 = vmatmul.mubr.f32.gmra.mrb[54].mxu0 %v1958_v14 }
 0x23c   : > { %1433 = vmatprep.mubr.f32.mxu0 %v2670_v48 }
 0x23d   : > { %1589 = vmatmul.mubr.f32.gmra.mrb[54].mxu1 %v1958_v14 }
 0x23e   : > { %1594 = vmatprep.mubr.f32.mxu1 %v2670_v48 }
 0x23f   : > { %1434 = vmatmul.mubr.f32.gmra.mrb[56].mxu0 %v1959_v10 }
 0x240   : > { %1439 = vmatprep.mubr.f32.mxu0 %v2670_v48 }
 0x241   : > { %1595 = vmatmul.mubr.f32.gmra.mrb[56].mxu1 %v1959_v10 }
 0x242   : > { %1600 = vmatprep.mubr.f32.mxu1 %v2670_v48 }
 0x243   : > { %1440 = vmatmul.mubr.f32.gmra.mrb[58].mxu0 %v1960_v15 }
 0x244   : > { %1445 = vmatprep.mubr.f32.mxu0 %v2670_v48 }
 0x245   : > { %1601 = vmatmul.mubr.f32.gmra.mrb[58].mxu1 %v1960_v15 }
 0x246   : > { %1606 = vmatprep.mubr.f32.mxu1 %v2670_v48 }
 0x247   : > { %1446 = vmatmul.mubr.f32.gmra.mrb[60].mxu0 %v1961_v16 }
 0x248   : > { %1451 = vmatprep.mubr.f32.mxu0 %v2670_v48 }
 0x249   : > { %1607 = vmatmul.mubr.f32.gmra.mrb[60].mxu1 %v1961_v16 }
 0x24a   : > { %1612 = vmatprep.mubr.f32.mxu1 %v2670_v48 }
 0x24b   : > { %1452 = vmatmul.mubr.f32.gmra.mrb[62].mxu0 %v1962_v17 }
 0x24c   : > { %1758 = vmatprep.mubr.f32.mxu0 %v2670_v48 }
 0x24d   : > { %1613 = vmatmul.mubr.f32.gmra.mrb[62].mxu1 %v1962_v17 }
 0x24e   : > { %1829 = vmatprep.mubr.f32.mxu1 %v2670_v48 }
 0x2e2   : > { %v1363_v19 = vpop.f32.mrb[32].mxu0 }
 0x2e3   : > { %v1364_v20 = vadd.f32 %v1363_v19, %v1220_v18  ;;  %v1365_v21 = vpop.f32.mrb[33].mxu0 }
 0x2e4   : > { %v1524_v11 = vpop.f32.mrb[32].mxu1  ;;  %v1366_v12 = vadd.f32 %v1365_v21, %v1220_v18 }
 0x2e5   : > { %2477 = vtanh.f32 %v1364_v20  ;;  %v1525_v22 = vadd.f32 %v1524_v11, %v1220_v18  ;;  %v1526_v13 = vpop.f32.mrb[33].mxu1 }
 0x2e6   : > { %2479 = vtanh.f32 %v1366_v12  ;;  %v1527_v24 = vadd.f32 %v1526_v13, %v1220_v18  ;;  %v1369_v25 = vpop.f32.mrb[34].mxu0 }
 0x2e7   : > { %2481 = vtanh.f32 %v1525_v22  ;;  %v1370_v26 = vadd.f32 %v1369_v25, %v1225_v23  ;;  %v1371_v27 = vpop.f32.mrb[35].mxu0 }
 0x2e8   : > { %2483 = vtanh.f32 %v1527_v24  ;;  %v1530_v28 = vpop.f32.mrb[34].mxu1  ;;  %v1372_v29 = vadd.f32 %v1371_v27, %v1225_v23 }
 0x2e9   : > { %2485 = vtanh.f32 %v1370_v26  ;;  %v1531_v48 = vadd.f32 %v1530_v28, %v1225_v23  ;;  %v1532_v30 = vpop.f32.mrb[35].mxu1 }
 0x2ea   : > { %2487 = vtanh.f32 %v1372_v29  ;;  %v1533_v32 = vadd.f32 %v1532_v30, %v1225_v23  ;;  %v1375_v33 = vpop.f32.mrb[36].mxu0  ;;  %v1250_v23 = vpop.permute.xlu0 %1249 }
 0x2eb   : > { %2489 = vtanh.f32 %v1531_v48  ;;  %v1376_v34 = vadd.f32 %v1375_v33, %v1230_v31  ;;  %v1377_v35 = vpop.f32.mrb[37].mxu0 }
 0x2ec   : > { %2491 = vtanh.f32 %v1533_v32  ;;  %v1536_v36 = vpop.f32.mrb[36].mxu1  ;;  %v1378_v37 = vadd.f32 %v1377_v35, %v1230_v31 }
 0x2ed   : > { %2493 = vtanh.f32 %v1376_v34  ;;  %v1537_v38 = vadd.f32 %v1536_v36, %v1230_v31  ;;  %v1538_v39 = vpop.f32.mrb[37].mxu1 }
 0x2ee   : > { %2495 = vtanh.f32 %v1378_v37  ;;  %v1539_v41 = vadd.f32 %v1538_v39, %v1230_v31  ;;  %v1381_v42 = vpop.f32.mrb[38].mxu0  ;;  %v1255_v37 = vpop.permute.xlu1 %1254 }
 0x2ef   : > { %v2478_v43 = vpop.eup %2477  ;;  %2497 = vtanh.f32 %v1537_v38  ;;  %v1382_v44 = vadd.f32 %v1381_v42, %v1235_v40  ;;  %v1383_v45 = vpop.f32.mrb[39].mxu0 }
 0x2f0   : > { %v2480_v46 = vpop.eup %2479  ;;  %2499 = vtanh.f32 %v1539_v41  ;;  %v1542_v47 = vpop.f32.mrb[38].mxu1  ;;  %v1384_v49 = vadd.f32 %v1383_v45, %v1235_v40 }
 0x2f1   : > { %v2482_v50 = vpop.eup %2481  ;;  %2501 = vtanh.f32 %v1382_v44  ;;  %v1543_v51 = vadd.f32 %v1542_v47, %v1235_v40  ;;  %v1544_v52 = vpop.f32.mrb[39].mxu1 }
 0x2f2   : > { %v2484_v53 = vpop.eup %2483  ;;  %2503 = vtanh.f32 %v1384_v49  ;;  %v1545_v55 = vadd.f32 %v1544_v52, %v1235_v40  ;;  %v1387_v56 = vpop.f32.mrb[40].mxu0 }
 0x2f3   : > { %v2486_v57 = vpop.eup %2485  ;;  %2505 = vtanh.f32 %v1543_v51  ;;  %v1388_v58 = vadd.f32 %v1387_v56, %v1240_v54  ;;  %v1389_v59 = vpop.f32.mrb[41].mxu0 }
 0x2f4   : > { %v2488_v60 = vpop.eup %2487  ;;  %2507 = vtanh.f32 %v1545_v55  ;;  %v1548_v62 = vpop.f32.mrb[40].mxu1  ;;  %v1390_v63 = vadd.f32 %v1389_v59, %v1240_v54  ;;  %v2115_v1 = vpack.c.bf16 %v2486_v57, %v2478_v43 }
 0x2f5   : > { %v2490_v2 = vpop.eup %2489  ;;  %2509 = vtanh.f32 %v1388_v58  ;;  %v1549_v4 = vadd.f32 %v1548_v62, %v1240_v54  ;;  %v1550_v5 = vpop.f32.mrb[41].mxu1  ;;  %v2113_v6 = vpack.c.bf16 %v2488_v60, %v2480_v46 }
 0x2f6   : > { %v2492_v7 = vpop.eup %2491  ;;  %2511 = vtanh.f32 %v1390_v63  ;;  %v1551_v9 = vadd.f32 %v1550_v5, %v1240_v54  ;;  %v1393_v14 = vpop.f32.mrb[42].mxu0  ;;  %v2147_v10 = vpack.c.bf16 %v2490_v2, %v2482_v50 }
 0x2f7   : > { %v2494_v15 = vpop.eup %2493  ;;  %2513 = vtanh.f32 %v1549_v4  ;;  %v1394_v16 = vadd.f32 %v1393_v14, %v1245_v8  ;;  %v1395_v17 = vpop.f32.mrb[43].mxu0  ;;  %2114 = vmatprep.subr.bf16.mxu0 %v2113_v6  ;;  %v2145_v18 = vpack.c.bf16 %v2492_v7, %v2484_v53 }
 0x2f8   : > { %v2496_v19 = vpop.eup %2495  ;;  %2515 = vtanh.f32 %v1551_v9  ;;  %v1554_v20 = vpop.f32.mrb[42].mxu1  ;;  %v1396_v21 = vadd.f32 %v1395_v17, %v1245_v8  ;;  %2116 = vmatpush1.bf16.msra.mxu0 %v2115_v1 }
 0x2f9   : > { %v2498_v11 = vpop.eup %2497  ;;  %2517 = vtanh.f32 %v1394_v16  ;;  %v1555_v12 = vadd.f32 %v1554_v20, %v1245_v8  ;;  %v1556_v22 = vpop.f32.mrb[43].mxu1  ;;  %2146 = vmatprep.subr.bf16.mxu1 %v2145_v18 }
 0x2fa   : > { %v2500_v13 = vpop.eup %2499  ;;  %2519 = vtanh.f32 %v1396_v21  ;;  %v1557_v24 = vadd.f32 %v1556_v22, %v1245_v8  ;;  %2148 = vmatpush1.bf16.msra.mxu1 %v2147_v10  ;;  %v1399_v25 = vpop.f32.mrb[44].mxu0 }
 0x2fb   : > { %v2502_v26 = vpop.eup %2501  ;;  %2521 = vtanh.f32 %v1555_v12  ;;  %v1400_v27 = vadd.f32 %v1399_v25, %v1250_v23  ;;  %v1401_v28 = vpop.f32.mrb[45].mxu0 }
 0x2fc   : > { %v2504_v29 = vpop.eup %2503  ;;  %2523 = vtanh.f32 %v1557_v24  ;;  %v1560_v48 = vpop.f32.mrb[44].mxu1  ;;  %v1402_v30 = vadd.f32 %v1401_v28, %v1250_v23  ;;  %v2119_v31 = vpack.c.bf16 %v2502_v26, %v2494_v15 }
 0x2fd   : > { %v2506_v32 = vpop.eup %2505  ;;  %2525 = vtanh.f32 %v1400_v27  ;;  %v1561_v33 = vadd.f32 %v1560_v48, %v1250_v23  ;;  %v1562_v34 = vpop.f32.mrb[45].mxu1  ;;  %v2117_v35 = vpack.c.bf16 %v2504_v29, %v2496_v19 }
 0x2fe   : > { %v2508_v36 = vpop.eup %2507  ;;  %2527 = vtanh.f32 %v1402_v30  ;;  %v1563_v38 = vadd.f32 %v1562_v34, %v1250_v23  ;;  %v1405_v39 = vpop.f32.mrb[46].mxu0  ;;  %v2151_v40 = vpack.c.bf16 %v2506_v32, %v2498_v11 }
 0x2ff   : > { %v2510_v41 = vpop.eup %2509  ;;  %2529 = vtanh.f32 %v1561_v33  ;;  %v1406_v42 = vadd.f32 %v1405_v39, %v1255_v37  ;;  %v1407_v43 = vpop.f32.mrb[47].mxu0  ;;  %2118 = vmatprep.subr.bf16.mxu0 %v2117_v35  ;;  %v2149_v44 = vpack.c.bf16 %v2508_v36, %v2500_v13 }
 0x300   : > { %v2512_v45 = vpop.eup %2511  ;;  %2531 = vtanh.f32 %v1563_v38  ;;  %v1566_v46 = vpop.f32.mrb[46].mxu1  ;;  %v1408_v47 = vadd.f32 %v1407_v43, %v1255_v37  ;;  %2120 = vmatpush1.bf16.msra.mxu0 %v2119_v31 }
 0x301   : > { %v2514_v49 = vpop.eup %2513  ;;  %2533 = vtanh.f32 %v1406_v42  ;;  %v1567_v50 = vadd.f32 %v1566_v46, %v1255_v37  ;;  %v1568_v51 = vpop.f32.mrb[47].mxu1  ;;  %2150 = vmatprep.subr.bf16.mxu1 %v2149_v44 }
 0x302   : > { %v2516_v52 = vpop.eup %2515  ;;  %v1260_v53 = vpop.permute.xlu0 %1259  ;;  %2535 = vtanh.f32 %v1408_v47  ;;  %v1569_v54 = vadd.f32 %v1568_v51, %v1255_v37  ;;  %2152 = vmatpush1.bf16.msra.mxu1 %v2151_v40 }
 0x303   : > { %v1411_v55 = vpop.f32.mrb[48].mxu0  ;;  %v2518_v56 = vpop.eup %2517  ;;  %2537 = vtanh.f32 %v1567_v50 }
 0x304   : > { %v1412_v57 = vadd.f32 %v1411_v55, %v1260_v53  ;;  %v1413_v58 = vpop.f32.mrb[49].mxu0  ;;  %v2520_v59 = vpop.eup %2519  ;;  %2539 = vtanh.f32 %v1569_v54  ;;  %v2123_v63 = vpack.c.bf16 %v2518_v56, %v2510_v41 }
 0x305   : > { %v1572_v60 = vpop.f32.mrb[48].mxu1  ;;  %v1414_v62 = vadd.f32 %v1413_v58, %v1260_v53  ;;  %v2522_v1 = vpop.eup %2521  ;;  %v2121_v5 = vpack.c.bf16 %v2520_v59, %v2512_v45 }
 0x306   : > { %2541 = vtanh.f32 %v1412_v57  ;;  %v1573_v2 = vadd.f32 %v1572_v60, %v1260_v53  ;;  %v1574_v4 = vpop.f32.mrb[49].mxu1  ;;  %v2524_v6 = vpop.eup %2523  ;;  %v2155_v14 = vpack.c.bf16 %v2522_v1, %v2514_v49 }
 0x307   : > { %v1265_v7 = vpop.permute.xlu1 %1264  ;;  %2543 = vtanh.f32 %v1414_v62  ;;  %v1575_v8 = vadd.f32 %v1574_v4, %v1260_v53  ;;  %v1417_v9 = vpop.f32.mrb[50].mxu0  ;;  %2122 = vmatprep.subr.bf16.mxu0 %v2121_v5  ;;  %v2153_v17 = vpack.c.bf16 %v2524_v6, %v2516_v52 }
 0x308   : > { %v2526_v10 = vpop.eup %2525  ;;  %2545 = vtanh.f32 %v1573_v2  ;;  %v1418_v15 = vadd.f32 %v1417_v9, %v1265_v7  ;;  %v1419_v16 = vpop.f32.mrb[51].mxu0  ;;  %2124 = vmatpush1.bf16.msra.mxu0 %v2123_v63 }
 0x309   : > { %v2528_v18 = vpop.eup %2527  ;;  %2547 = vtanh.f32 %v1575_v8  ;;  %v1578_v19 = vpop.f32.mrb[50].mxu1  ;;  %v1420_v20 = vadd.f32 %v1419_v16, %v1265_v7  ;;  %2154 = vmatprep.subr.bf16.mxu1 %v2153_v17 }
 0x30a   : > { %v2530_v21 = vpop.eup %2529  ;;  %2549 = vtanh.f32 %v1418_v15  ;;  %v1579_v11 = vadd.f32 %v1578_v19, %v1265_v7  ;;  %v1580_v12 = vpop.f32.mrb[51].mxu1  ;;  %2156 = vmatpush1.bf16.msra.mxu1 %v2155_v14 }
 0x30b   : > { %v2532_v22 = vpop.eup %2531  ;;  %v1270_v13 = vpop.permute.xlu0 %1269  ;;  %2551 = vtanh.f32 %v1420_v20  ;;  %v1581_v23 = vadd.f32 %v1580_v12, %v1265_v7 }
 0x30c   : > { %v1423_v24 = vpop.f32.mrb[52].mxu0  ;;  %v2534_v25 = vpop.eup %2533  ;;  %2553 = vtanh.f32 %v1579_v11 }
 0x30d   : > { %v1424_v26 = vadd.f32 %v1423_v24, %v1270_v13  ;;  %v1425_v27 = vpop.f32.mrb[53].mxu0  ;;  %v2536_v28 = vpop.eup %2535  ;;  %2555 = vtanh.f32 %v1581_v23  ;;  %v2127_v30 = vpack.c.bf16 %v2534_v25, %v2526_v10 }
 0x30e   : > { %v1584_v29 = vpop.f32.mrb[52].mxu1  ;;  %v1426_v48 = vadd.f32 %v1425_v27, %v1270_v13  ;;  %v2538_v31 = vpop.eup %2537  ;;  %v2125_v34 = vpack.c.bf16 %v2536_v28, %v2528_v18 }
 0x30f   : > { %2557 = vtanh.f32 %v1424_v26  ;;  %v1585_v32 = vadd.f32 %v1584_v29, %v1270_v13  ;;  %v1586_v33 = vpop.f32.mrb[53].mxu1  ;;  %v2540_v35 = vpop.eup %2539  ;;  %v2159_v39 = vpack.c.bf16 %v2538_v31, %v2530_v21 }
 0x310   : > { %v1275_v36 = vpop.permute.xlu1 %1274  ;;  %2559 = vtanh.f32 %v1426_v48  ;;  %v1587_v37 = vadd.f32 %v1586_v33, %v1270_v13  ;;  %v1429_v38 = vpop.f32.mrb[54].mxu0  ;;  %2126 = vmatprep.subr.bf16.mxu0 %v2125_v34  ;;  %v2157_v43 = vpack.c.bf16 %v2540_v35, %v2532_v22 }
 0x311   : > { %v2542_v40 = vpop.eup %2541  ;;  %2561 = vtanh.f32 %v1585_v32  ;;  %v1430_v41 = vadd.f32 %v1429_v38, %v1275_v36  ;;  %v1431_v42 = vpop.f32.mrb[55].mxu0  ;;  %2128 = vmatpush1.bf16.msra.mxu0 %v2127_v30 }
 0x312   : > { %v2544_v44 = vpop.eup %2543  ;;  %2563 = vtanh.f32 %v1587_v37  ;;  %v1590_v45 = vpop.f32.mrb[54].mxu1  ;;  %v1432_v46 = vadd.f32 %v1431_v42, %v1275_v36  ;;  %2158 = vmatprep.subr.bf16.mxu1 %v2157_v43 }
 0x313   : > { %v2546_v47 = vpop.eup %2545  ;;  %2565 = vtanh.f32 %v1430_v41  ;;  %v1591_v49 = vadd.f32 %v1590_v45, %v1275_v36  ;;  %v1592_v50 = vpop.f32.mrb[55].mxu1  ;;  %2160 = vmatpush1.bf16.msra.mxu1 %v2159_v39 }
 0x314   : > { %v2548_v51 = vpop.eup %2547  ;;  %v1280_v52 = vpop.permute.xlu0 %1279  ;;  %2567 = vtanh.f32 %v1432_v46  ;;  %v1593_v53 = vadd.f32 %v1592_v50, %v1275_v36 }
 0x315   : > { %v1435_v54 = vpop.f32.mrb[56].mxu0  ;;  %v2550_v55 = vpop.eup %2549  ;;  %2569 = vtanh.f32 %v1591_v49 }
 0x316   : > { %v1436_v56 = vadd.f32 %v1435_v54, %v1280_v52  ;;  %v1437_v57 = vpop.f32.mrb[57].mxu0  ;;  %v2552_v58 = vpop.eup %2551  ;;  %2571 = vtanh.f32 %v1593_v53  ;;  %v2131_v62 = vpack.c.bf16 %v2550_v55, %v2542_v40 }
 0x317   : > { %v1596_v59 = vpop.f32.mrb[56].mxu1  ;;  %v1438_v60 = vadd.f32 %v1437_v57, %v1280_v52  ;;  %v2554_v63 = vpop.eup %2553  ;;  %v2129_v4 = vpack.c.bf16 %v2552_v58, %v2544_v44 }
 0x318   : > { %2573 = vtanh.f32 %v1436_v56  ;;  %v1597_v1 = vadd.f32 %v1596_v59, %v1280_v52  ;;  %v1598_v2 = vpop.f32.mrb[57].mxu1  ;;  %v2556_v5 = vpop.eup %2555  ;;  %v2163_v9 = vpack.c.bf16 %v2554_v63, %v2546_v47 }
 0x319   : > { %v1285_v6 = vpop.permute.xlu1 %1284  ;;  %2575 = vtanh.f32 %v1438_v60  ;;  %v1599_v7 = vadd.f32 %v1598_v2, %v1280_v52  ;;  %v1441_v8 = vpop.f32.mrb[58].mxu0  ;;  %2130 = vmatprep.subr.bf16.mxu0 %v2129_v4  ;;  %v2161_v16 = vpack.c.bf16 %v2556_v5, %v2548_v51 }
 0x31a   : > { %v2558_v14 = vpop.eup %2557  ;;  %2577 = vtanh.f32 %v1597_v1  ;;  %v1442_v10 = vadd.f32 %v1441_v8, %v1285_v6  ;;  %v1443_v15 = vpop.f32.mrb[59].mxu0  ;;  %2132 = vmatpush1.bf16.msra.mxu0 %v2131_v62 }
 0x31b   : > { %v2560_v17 = vpop.eup %2559  ;;  %2579 = vtanh.f32 %v1599_v7  ;;  %v1602_v18 = vpop.f32.mrb[58].mxu1  ;;  %v1444_v19 = vadd.f32 %v1443_v15, %v1285_v6  ;;  %2162 = vmatprep.subr.bf16.mxu1 %v2161_v16  ;;  %v2671_v15 = vmov 1966171168  }
 0x31c   : > { %v2562_v20 = vpop.eup %2561  ;;  %2581 = vtanh.f32 %v1442_v10  ;;  %v1603_v21 = vadd.f32 %v1602_v18, %v1285_v6  ;;  %v1604_v11 = vpop.f32.mrb[59].mxu1  ;;  %2164 = vmatpush1.bf16.msra.mxu1 %v2163_v9  ;;  %v1683_v10 = vld [vmem:[%s3262_s5] sm:$0x1]  ;;  %v1843_v16 = vunpack.c.l.s4 %v2671_v15 }
 0x31d   : > { %v2564_v12 = vpop.eup %2563  ;;  %v1290_v22 = vpop.permute.xlu0 %1289  ;;  %2583 = vtanh.f32 %v1444_v19  ;;  %v1605_v13 = vadd.f32 %v1604_v11, %v1285_v6 }
 0x31e   : > { %v1447_v23 = vpop.f32.mrb[60].mxu0  ;;  %v2566_v24 = vpop.eup %2565  ;;  %2585 = vtanh.f32 %v1603_v21  ;;  %v1844_v18 = vunpack.c.0.s8 %v1843_v16 }
 0x31f   : > { %v1448_v25 = vadd.f32 %v1447_v23, %v1290_v22  ;;  %v1449_v26 = vpop.f32.mrb[61].mxu0  ;;  %v2568_v27 = vpop.eup %2567  ;;  %2587 = vtanh.f32 %v1605_v13  ;;  %v2135_v48 = vpack.c.bf16 %v2566_v24, %v2558_v14 }
 0x320   : > { %v1608_v28 = vpop.f32.mrb[60].mxu1  ;;  %v1450_v29 = vadd.f32 %v1449_v26, %v1290_v22  ;;  %v2570_v30 = vpop.eup %2569  ;;  %v2133_v33 = vpack.c.bf16 %v2568_v27, %v2560_v17  ;;  %v1847_v13 = vsub.s32 %v1844_v18, %v2948_v0 }
 0x321   : > { %2589 = vtanh.f32 %v1448_v25  ;;  %v1609_v31 = vadd.f32 %v1608_v28, %v1290_v22  ;;  %v1610_v32 = vpop.f32.mrb[61].mxu1  ;;  %v2572_v34 = vpop.eup %2571  ;;  %v2167_v38 = vpack.c.bf16 %v2570_v30, %v2562_v20 }
 0x322   : > { %v1295_v35 = vpop.permute.xlu1 %1294  ;;  %2591 = vtanh.f32 %v1450_v29  ;;  %v1611_v36 = vadd.f32 %v1610_v32, %v1290_v22  ;;  %v1453_v37 = vpop.f32.mrb[62].mxu0  ;;  %2134 = vmatprep.subr.bf16.mxu0 %v2133_v33  ;;  %v2165_v42 = vpack.c.bf16 %v2572_v34, %v2564_v12 }
 0x323   : > { %v2574_v39 = vpop.eup %2573  ;;  %2593 = vtanh.f32 %v1609_v31  ;;  %v1454_v40 = vadd.f32 %v1453_v37, %v1295_v35  ;;  %v1455_v41 = vpop.f32.mrb[63].mxu0  ;;  %2136 = vmatpush1.bf16.msra.mxu0 %v2135_v48 }
 0x324   : > { %v2576_v43 = vpop.eup %2575  ;;  %2595 = vtanh.f32 %v1611_v36  ;;  %v1614_v44 = vpop.f32.mrb[62].mxu1  ;;  %v1456_v45 = vadd.f32 %v1455_v41, %v1295_v35  ;;  %2166 = vmatprep.subr.bf16.mxu1 %v2165_v42 }
 0x325   : > { %v2578_v46 = vpop.eup %2577  ;;  %2597 = vtanh.f32 %v1454_v40  ;;  %v1615_v47 = vadd.f32 %v1614_v44, %v1295_v35  ;;  %v1616_v49 = vpop.f32.mrb[63].mxu1  ;;  %2168 = vmatpush1.bf16.msra.mxu1 %v2167_v38 }
 0x326   : > { %v2580_v50 = vpop.eup %2579  ;;  %2599 = vtanh.f32 %v1456_v45  ;;  %v1617_v51 = vadd.f32 %v1616_v49, %v1295_v35  ;;  %v1688_v17 = vpop.permute.xlu0 %1687 }
 0x327   : > { %v2582_v52 = vpop.eup %2581  ;;  %2601 = vtanh.f32 %v1615_v47  ;;  %v1693_v19 = vrot.slane %v1688_v17, %v379_v3 }
 0x328   : > { %v2584_v53 = vpop.eup %2583  ;;  %2603 = vtanh.f32 %v1617_v51  ;;  %v2139_v54 = vpack.c.bf16 %v2582_v52, %v2574_v39 }
 0x329   : > { %v2586_v55 = vpop.eup %2585  ;;  %v2137_v56 = vpack.c.bf16 %v2584_v53, %v2576_v43 }
 0x32a   : > { %v2588_v57 = vpop.eup %2587  ;;  %v2171_v58 = vpack.c.bf16 %v2586_v55, %v2578_v46 }
 0x32b   : > { %v2590_v59 = vpop.eup %2589  ;;  %2138 = vmatprep.subr.bf16.mxu0 %v2137_v56  ;;  %v2169_v60 = vpack.c.bf16 %v2588_v57, %v2580_v50 }
 0x32c   : > { %v2592_v62 = vpop.eup %2591  ;;  %2140 = vmatpush1.bf16.msra.mxu0 %v2139_v54 }
 0x32d   : > { %v2594_v63 = vpop.eup %2593  ;;  %2170 = vmatprep.subr.bf16.mxu1 %v2169_v60 }
 0x32e   : > { %v2596_v1 = vpop.eup %2595  ;;  %2172 = vmatpush1.bf16.msra.mxu1 %v2171_v58 }
 0x32f   : > { %v2598_v2 = vpop.eup %2597 }
 0x330   : > { %v2600_v4 = vpop.eup %2599  ;;  %v2143_v5 = vpack.c.bf16 %v2598_v2, %v2590_v59 }
 0x331   : > { %v2602_v6 = vpop.eup %2601  ;;  %v2141_v7 = vpack.c.bf16 %v2600_v4, %v2592_v62 }
 0x332   : > { %v2604_v8 = vpop.eup %2603  ;;  %v2175_v9 = vpack.c.bf16 %v2602_v6, %v2594_v63 }
 0x333   : > { %2142 = vmatprep.subr.bf16.mxu0 %v2141_v7  ;;  %v2173_v14 = vpack.c.bf16 %v2604_v8, %v2596_v1 }
 0x334   : > { %2144 = vmatpush1.bf16.msra.mxu0 %v2143_v5 }
 0x335   : > { %2174 = vmatprep.subr.bf16.mxu1 %v2173_v14 }
 0x336   : > { %2176 = vmatpush1.bf16.msra.mxu1 %v2175_v9 }
 0x337   : > { %1759 = vmatmul.mubr.f32.vlgmr.msra.gmra.mrb[64].mxu0 %v1683_v10 }
 0x339   : > { %1830 = vmatmul.mubr.f32.vlgmr.msra.gmra.mrb[64].mxu1 %v1683_v10 }
 0x40a   : > { %v1760_v20 = vpop.f32.mrb[64].mxu0 }
 0x40b   : > { %v1761_v21 = vadd.f32 %v1760_v20, %v1693_v19  ;;  %v1762_v11 = vpop.f32.mrb[65].mxu0 }
 0x40c   : > { %v1831_v12 = vpop.f32.mrb[64].mxu1  ;;  %v1763_v22 = vadd.f32 %v1762_v11, %v1693_v19 }
 0x40d   : > { %v1832_v23 = vadd.f32 %v1831_v12, %v1693_v19  ;;  %v1833_v24 = vpop.f32.mrb[65].mxu1 }
 0x40e   : > { %v1840_v25 = vcombine.low %v1761_v21, %v1763_v22  ;;  %v1834_v26 = vadd.f32 %v1833_v24, %v1693_v19 }
 0x410   : > { %v1848_v27 = vrot.slane %v1840_v25, %v1847_v13  ;;  %v1841_v28 = vcombine.low %v1832_v23, %v1834_v26 }
 0x412   : > { %v1855_v29 = vrot.slane %v1841_v28, %v1847_v13 }
 0x414   : > { %v1856_v3 = vcombine.low %v1848_v27, %v1855_v29 }
 0x416   : > { %v1863_v48 = vrot.slane %v1856_v3, %v1847_v13 }
 0x418   : > { %1869 = vst.msk [vmem:[%s272_s20] sm:$0xf] %vm1867_vm0, %v1863_v48 }
 0x419   : > { %2618 = shalt.err (!%p2615_p3)
}
 0x41a   : > { %s2619_s14 = scalar_lea.hbm %s3215_s25, 64  ;;  %s2623_s17 = scalar_lea.hbm %s3264_s7, 128 }
 0x41b   : > { %p2620_p4 = scmp.ne.s32.totalorder %s3215_s25, %s2619_s14  ;;  %p2624_p9 = scmp.lt.u32.totalorder %s3215_s25, %s3264_s7 }
 0x41c   : > { %p2625_p10 = scmp.lt.u32.totalorder %s2623_s17, %s2619_s14  ;;  %p2627_p12 = scmp.lt.u32.totalorder %s2619_s14, %s3215_s25 }
 0x41d   : > { %p2621_p7 = pnand %p2620_p4, %p2754_p5 }
 0x41e   : > { %p2626_p11 = por %p2625_p10, %p2624_p9 }
 0x41f   : > { %p2622_p8 = pneg %p2621_p7 }
 0x420   : > { %p2628_p13 = por %p2627_p12, %p2626_p11 }
 0x422   : > { %p2629_p0 = pnand %p2628_p13, %p2622_p8 }
 0x424   : > { %2632 = shalt.err (!%p2629_p0)
}
 0x425   : > { %2177 = dma.vmem_to_hbm [thread:$0]  (%p2754_p5), %s3217_s22, 64, %s3215_s25, %s1871_s30  }
 0x426 PF: > { %p2183_p1 = scmp.ge.s32.totalorder %s2667_s29, 2  ;;  %s1897_s20 = sand.u32 1, %s2655_s26  }
 0x427   : > { %s1898_s23 = scalar_lea.sflag [#allocation4], %s1897_s20 }
 0x428   : > { %p2180_p2 = pnand %p2183_p1, %p2758_p6 }
 0x42a   : > { %2650 = dma.done.wait (!%p2180_p2), %s1898_s23, 64  }
 0x42b   : > { %2652 = vsyncadd (!%p2180_p2), %s1898_s23, 4294967232  ;;  %p19_p3 = scmp.ge.s32.totalorder %s2741_s8, 4   ;;  %s3267_s26 = smov %s2659_s27 }
 0x42c   : > { %s3268_s27 = smov %s2663_s28  ;;  %s3269_s28 = smov %s2752_s11 }
 0x42d   : > { %s3270_s29 = smov %s2741_s8  ;;  %21 = sbr.rel (!%p19_p3) target bundleno = 6 (0x6), region = 85 }
 0x434   :  { %1903 = vsyncpa [#allocation4], 1 }
 0x435   :  { %1905 = vsyncpa [#allocation4 + $0x1], 1 }

</bundles_post_ra>
